<compile_context>
chip_gen: v7x
topology: tpu7x:2x2x1
jax: 0.10.0
libtpu: 0.0.40
codegen_flags: <defaults>
</compile_context>

<pallas_src>
import functools

import jax
import jax.numpy as jnp
from jax import lax
from jax.experimental import pallas as pl
from jax.experimental.pallas import tpu as pltpu

H_DIM = 8                      # module's self.h_dim
BN_EPS = 1e-5                  # nn.BatchNorm2d default eps
TM_CAP = 1024                  # max rows per M tile when tiling is needed
ACC_CACHE_BYTES_CAP = 24 * 1024 * 1024   # f32 acc-cache budget (v7x-safe)
VMEM_LIMIT = 40 * 1024 * 1024            # <= v7x 64 MiB physical VMEM


def _round_up(v, m):
    return (v + m - 1) // m * m


def _apply_activation(x, activation):
    if activation == "elu0":            # nn.ELU(alpha=0): x>0 -> x, else 0
        return jnp.maximum(x, 0.0)
    if activation == "sigmoid":
        return jax.nn.sigmoid(x)
    return x


# --------------------------------------------------------------------------
# Conv(+BN+act) kernel:  out = act( BN( patches @ w ) )
# grid = (phase, m_tiles); phase 0 = matmul + batch stats (acc cached in VMEM),
# phase 1 = normalize + activation from the cached acc.  Conv bias is omitted
# (exactly cancelled by batch-stat BN).
# --------------------------------------------------------------------------
def _conv_bn_kernel(x_ref, w_ref, gamma_ref, beta_ref, o_ref,
                    sum_ref, sumsq_ref, *maybe_acc,
                    activation, m_total, cache_acc):
    phase = pl.program_id(0)
    m_idx = pl.program_id(1)
    acc_ref = maybe_acc[0] if cache_acc else None

    @pl.when(phase == 0)
    def _stats_pass():
        # bf16 MXU operands, f32 accumulation; epilogue stays in f32.
        acc = jnp.dot(x_ref[...], w_ref[...], preferred_element_type=jnp.float32)

        @pl.when(m_idx == 0)
        def _init():
            sum_ref[...] = jnp.zeros_like(sum_ref)
            sumsq_ref[...] = jnp.zeros_like(sumsq_ref)

        # One-pass stats: var = E[x^2] - mean^2 (clamped).  Zero-padded rows
        # contribute nothing, so dividing by the true M keeps stats exact.
        sum_ref[...] += jnp.sum(acc, axis=0, keepdims=True)
        sumsq_ref[...] += jnp.sum(acc * acc, axis=0, keepdims=True)
        if cache_acc:
            acc_ref[m_idx] = acc
        # No o_ref write here: the out index_map pins phase 0 to block 0,
        # which is (re)written by phase 1 before it is ever copied out.

    @pl.when(phase == 1)
    def _normalize_pass():
        if cache_acc:
            acc = acc_ref[m_idx]
        else:   # large-M fallback: recompute the (cheap) tile matmul
            acc = jnp.dot(x_ref[...], w_ref[...],
                          preferred_element_type=jnp.float32)
        inv_m = jnp.float32(1.0 / m_total)
        mean = sum_ref[...] * inv_m
        var = jnp.maximum(sumsq_ref[...] * inv_m - mean * mean, 0.0)
        scale = gamma_ref[...] * lax.rsqrt(var + BN_EPS)
        y = (acc - mean) * scale + beta_ref[...]
        o_ref[...] = _apply_activation(y, activation).astype(o_ref.dtype)


def _fused_conv_bn(x2d, w2d, gamma, beta, *, activation):
    """bf16 (M, K) patches @ (K, Cout) weights -> bf16 (M, Cout), BN + act."""
    m, k = x2d.shape
    _, n_out = w2d.shape

    if m <= TM_CAP:
        tm, num_m, m_pad = m, 1, m
    else:
        tm = TM_CAP
        m_pad = _round_up(m, tm)
        num_m = m_pad // tm
        if m_pad != m:
            x2d = jnp.pad(x2d, ((0, m_pad - m), (0, 0)))   # zero rows

    cache_acc = (num_m * tm * n_out * 4) <= ACC_CACHE_BYTES_CAP

    g2 = gamma.reshape(1, n_out).astype(jnp.float32)
    b2 = beta.reshape(1, n_out).astype(jnp.float32)

    kernel = functools.partial(_conv_bn_kernel, activation=activation,
                               m_total=m, cache_acc=cache_acc)

    if cache_acc:
        # Phase 1 never reads x: pin its index to block 0 so no re-DMA occurs.
        x_map = lambda p, mi: ((1 - p) * mi, 0)
    else:
        x_map = lambda p, mi: (mi, 0)

    scratch = [pltpu.VMEM((1, n_out), jnp.float32),    # column sums
               pltpu.VMEM((1, n_out), jnp.float32)]    # column sums of squares
    if cache_acc:
        scratch.append(pltpu.VMEM((num_m, tm, n_out), jnp.float32))

    passes = 1 if cache_acc else 2
    flops = 2 * m_pad * k * n_out * passes
    transc = m_pad * n_out if activation == "sigmoid" else 0
    bytes_acc = (m_pad * k * 2 * passes + k * n_out * 2
                 + 2 * n_out * 4 + m_pad * n_out * 2)

    out = pl.pallas_call(
        kernel,
        out_shape=jax.ShapeDtypeStruct((m_pad, n_out), jnp.bfloat16),
        grid_spec=pltpu.PrefetchScalarGridSpec(
            num_scalar_prefetch=0,
            grid=(2, num_m),
            in_specs=[
                pl.BlockSpec((tm, k), x_map),
                pl.BlockSpec((k, n_out), lambda p, mi: (0, 0)),   # resident
                pl.BlockSpec((1, n_out), lambda p, mi: (0, 0)),
                pl.BlockSpec((1, n_out), lambda p, mi: (0, 0)),
            ],
            # Phase 0 pinned to block 0 (never written); phase 1 writes block m.
            out_specs=pl.BlockSpec((tm, n_out), lambda p, mi: (p * mi, 0)),
            scratch_shapes=scratch,
        ),
        compiler_params=pltpu.CompilerParams(
            # Both axes sequential: stats accumulate across M tiles and the
            # phases are ordered.  TODO(synk): on v7x, split the normalize
            # phase into its own call with a "parallel" M axis for dual-TC.
            dimension_semantics=("arbitrary", "arbitrary"),
            vmem_limit_bytes=VMEM_LIMIT),
        cost_estimate=pl.CostEstimate(flops=flops, transcendentals=transc,
                                      bytes_accessed=bytes_acc),
    )(x2d, w2d, g2, b2)
    return out[:m] if m_pad != m else out


# --------------------------------------------------------------------------
# Linear (+ sigmoid) kernel — single phase, no BN.
# --------------------------------------------------------------------------
def _linear_kernel(x_ref, w_ref, b_ref, o_ref, *, activation):
    acc = jnp.dot(x_ref[...], w_ref[...], preferred_element_type=jnp.float32)
    acc = acc + b_ref[...]
    o_ref[...] = _apply_activation(acc, activation).astype(o_ref.dtype)


def _fused_linear(x2d, w2d, b, *, activation):
    m, k = x2d.shape
    _, n_out = w2d.shape
    if m <= TM_CAP:
        tm, num_m, m_pad = m, 1, m
    else:
        tm = TM_CAP
        m_pad = _round_up(m, tm)
        num_m = m_pad // tm
        x2d = jnp.pad(x2d, ((0, m_pad - m), (0, 0)))
    b2 = b.reshape(1, n_out).astype(jnp.float32)

    out = pl.pallas_call(
        functools.partial(_linear_kernel, activation=activation),
        out_shape=jax.ShapeDtypeStruct((m_pad, n_out), jnp.float32),
        grid_spec=pltpu.PrefetchScalarGridSpec(
            num_scalar_prefetch=0,
            grid=(num_m,),
            in_specs=[pl.BlockSpec((tm, k), lambda mi: (mi, 0)),
                      pl.BlockSpec((k, n_out), lambda mi: (0, 0)),
                      pl.BlockSpec((1, n_out), lambda mi: (0, 0))],
            out_specs=pl.BlockSpec((tm, n_out), lambda mi: (mi, 0)),
        ),
        compiler_params=pltpu.CompilerParams(
            dimension_semantics=("parallel",),
            vmem_limit_bytes=VMEM_LIMIT),
        cost_estimate=pl.CostEstimate(
            flops=2 * m_pad * k * n_out,
            transcendentals=m_pad * n_out if activation == "sigmoid" else 0,
            bytes_accessed=(m_pad * k * 2 + k * n_out * 2 + n_out * 4
                            + m_pad * n_out * 4)),
    )(x2d.astype(jnp.bfloat16), w2d.astype(jnp.bfloat16), b2)
    return out[:m] if m_pad != m else out


# --------------------------------------------------------------------------
# Plain-JAX glue: im2col for Conv2d(kernel=3, stride=2, padding=1), in bf16.
# TODO(synk): fuse this stride-2 9-tap gather into the conv kernel.
# --------------------------------------------------------------------------
def _im2col_k3_s2_p1(x_nhwc):
    n, h, w, c = x_nhwc.shape
    ho, wo = h // 2, w // 2            # h, w even => output spatial = h/2, w/2
    xp = jnp.pad(x_nhwc, ((0, 0), (1, 1), (1, 1), (0, 0)))
    taps = [xp[:, dh:dh + 2 * ho:2, dw:dw + 2 * wo:2, :]
            for dh in range(3) for dw in range(3)]
    patches = jnp.concatenate(taps, axis=-1)          # (N, Ho, Wo, 9*C)
    return patches.reshape(n * ho * wo, 9 * c), (n, ho, wo)


def _conv_layer(x_nhwc, layer_params, *, activation):
    """Conv2d(3,3,stride=2,pad=1) + BatchNorm2d(batch stats) + activation."""
    w, _b, gamma, beta = layer_params   # conv bias unused: cancelled by BN
    cout = w.shape[-1]
    patches, (n, ho, wo) = _im2col_k3_s2_p1(x_nhwc)
    w2d = w.reshape(-1, cout).astype(jnp.bfloat16)
    out2d = _fused_conv_bn(patches, w2d, gamma, beta, activation=activation)
    return out2d.reshape(n, ho, wo, cout)             # bf16, unpadded channels


# --------------------------------------------------------------------------
# Parameter init (deterministic, synthetic — no checkpoint load)
# --------------------------------------------------------------------------
def init_params(key, n_chan, height, width):
    hd = H_DIM
    chans = [n_chan, hd * 2, hd * 4, hd * 8, hd * 16]
    params = {"convs": []}
    for i in range(4):
        key, kw, kb, kg, kbt = jax.random.split(key, 5)
        cin, cout = chans[i], chans[i + 1]
        w = 0.1 * jax.random.normal(kw, (3, 3, cin, cout), jnp.float32)   # HWIO
        b = 0.05 * jax.random.normal(kb, (cout,), jnp.float32)
        gamma = 1.0 + 0.1 * jax.random.normal(kg, (cout,), jnp.float32)
        beta = 0.05 * jax.random.normal(kbt, (cout,), jnp.float32)
        params["convs"].append((w, b, gamma, beta))
    in_dim = hd * 16 * (height // 16) * (width // 16)   # matches module's lin in_dim
    key, kw, kb = jax.random.split(key, 3)
    params["lin_w"] = 0.05 * jax.random.normal(kw, (in_dim, 1), jnp.float32)
    params["lin_b"] = 0.05 * jax.random.normal(kb, (1,), jnp.float32)
    return params


# --------------------------------------------------------------------------
# Full forward (mirrors Adv_net.forward)
# --------------------------------------------------------------------------
def adv_net_forward(x_nchw, params):
    n = x_nchw.shape[0]
    # NCHW -> NHWC, single f32->bf16 cast; activations stay bf16 end-to-end.
    x = jnp.transpose(x_nchw, (0, 2, 3, 1)).astype(jnp.bfloat16)
    # conv1: Conv-BN-ELU(0), Conv-BN-ELU(0)
    x = _conv_layer(x, params["convs"][0], activation="elu0")
    x = _conv_layer(x, params["convs"][1], activation="elu0")
    # conv2: Conv-BN-ELU(0), Conv-BN-Sigmoid
    x = _conv_layer(x, params["convs"][2], activation="elu0")
    x = _conv_layer(x, params["convs"][3], activation="sigmoid")
    # TODO(synk): the PyTorch forward feeds the un-flattened 4-D conv output to
    # self.lin (shape-incompatible as written); we implement the intended
    # NCHW-order flatten consistent with lin's in_dim from __init__.
    x = jnp.transpose(x, (0, 3, 1, 2)).reshape(n, -1)
    out = _fused_linear(x, params["lin_w"], params["lin_b"],
                        activation="sigmoid")
    return out                                          # (N, 1) float32


if __name__ == "__main__":
    key = jax.random.PRNGKey(0)
    kx, kp = jax.random.split(key)
    # Small shapes consistent with the module (H, W divisible by 16).
    batch, n_chan, height, width = 2, 4, 32, 16
    x = jax.random.normal(kx, (batch, n_chan, height, width), jnp.float32)
    params = init_params(kp, n_chan, height, width)

    out = jax.jit(adv_net_forward)(x, params)
    out = jax.block_until_ready(out)

    assert out.shape == (batch, 1), out.shape
    assert bool(jnp.all(jnp.isfinite(out)))
    assert bool(jnp.all((out >= 0.0) & (out <= 1.0)))   # sigmoid output
    print("KERNEL_OK")
</pallas_src>

<mosaic_0001>
module attributes {stable_mosaic.version = 11 : i64} {
  func.func @_conv_bn_kernel(%arg0: i32, %arg1: i32, %arg2: memref<256x36xbf16, #tpu.memory_space<vmem>>, %arg3: memref<36x16xbf16, #tpu.memory_space<vmem>>, %arg4: memref<1x16xf32, #tpu.memory_space<vmem>>, %arg5: memref<1x16xf32, #tpu.memory_space<vmem>>, %arg6: memref<256x16xbf16, #tpu.memory_space<vmem>>, %arg7: memref<1x16xf32, #tpu.memory_space<vmem>>, %arg8: memref<1x16xf32, #tpu.memory_space<vmem>>, %arg9: memref<1x256x16xf32, #tpu.memory_space<vmem>>) attributes {dimension_semantics = [#tpu.dimension_semantics<arbitrary>, #tpu.dimension_semantics<arbitrary>], iteration_bounds = array<i64: 2, 1>, scalar_prefetch = 0 : i64, scratch_operands = 3 : i64, tpu.core_type = #tpu.core_type<tc>, window_params = [{transform_indices = @transform_0, window_bounds = array<i64: 256, 36>}, {pipeline_mode = #tpu.pipeline_mode<synchronous>, transform_indices = @transform_1, window_bounds = array<i64: 36, 16>}, {pipeline_mode = #tpu.pipeline_mode<synchronous>, transform_indices = @transform_2, window_bounds = array<i64: 1, 16>}, {pipeline_mode = #tpu.pipeline_mode<synchronous>, transform_indices = @transform_3, window_bounds = array<i64: 1, 16>}, {transform_indices = @transform_4, window_bounds = array<i64: 256, 16>}]} {
    %c0_i32 = arith.constant 0 : i32
    %0 = arith.cmpi eq, %arg0, %c0_i32 : i32
    %1 = arith.extui %0 : i1 to i32
    %c0_i32_0 = arith.constant 0 : i32
    %2 = arith.cmpi ne, %1, %c0_i32_0 : i32
    scf.if %2 {
      %c0 = arith.constant 0 : index
      %c0_2 = arith.constant 0 : index
      %6 = vector.load %arg2[%c0, %c0_2] : memref<256x36xbf16, #tpu.memory_space<vmem>>, vector<256x36xbf16>
      %c0_3 = arith.constant 0 : index
      %c0_4 = arith.constant 0 : index
      %7 = vector.load %arg3[%c0_3, %c0_4] : memref<36x16xbf16, #tpu.memory_space<vmem>>, vector<36x16xbf16>
      %cst = arith.constant dense<0.000000e+00> : vector<256x16xf32>
      %8 = tpu.matmul %6, %7, %cst {dimension_numbers = #tpu.dot_dimension_numbers<[1], [0], [0], [1], [0, 0, 1, 1], [], []>} : vector<256x36xbf16>, vector<36x16xbf16>, vector<256x16xf32> -> vector<256x16xf32>
      %c0_i32_5 = arith.constant 0 : i32
      %9 = arith.cmpi eq, %arg1, %c0_i32_5 : i32
      %10 = arith.extui %9 : i1 to i32
      %c0_i32_6 = arith.constant 0 : i32
      %11 = arith.cmpi ne, %10, %c0_i32_6 : i32
      scf.if %11 {
        %cst_19 = arith.constant 0.000000e+00 : f32
        %27 = vector.broadcast %cst_19 : f32 to vector<1x16xf32>
        %c0_20 = arith.constant 0 : index
        %c0_21 = arith.constant 0 : index
        %28 = vector.load %arg7[%c0_20, %c0_21] : memref<1x16xf32, #tpu.memory_space<vmem>>, vector<1x16xf32>
        tpu.vector_store %arg7[%c0_20, %c0_21], %27 {strides = array<i32>} : memref<1x16xf32, #tpu.memory_space<vmem>>, vector<1x16xf32>,
        %cst_22 = arith.constant 0.000000e+00 : f32
        %29 = vector.broadcast %cst_22 : f32 to vector<1x16xf32>
        %c0_23 = arith.constant 0 : index
        %c0_24 = arith.constant 0 : index
        %30 = vector.load %arg8[%c0_23, %c0_24] : memref<1x16xf32, #tpu.memory_space<vmem>>, vector<1x16xf32>
        tpu.vector_store %arg8[%c0_23, %c0_24], %29 {strides = array<i32>} : memref<1x16xf32, #tpu.memory_space<vmem>>, vector<1x16xf32>,
      } else {
      }
      %c0_7 = arith.constant 0 : index
      %c0_8 = arith.constant 0 : index
      %12 = vector.load %arg7[%c0_7, %c0_8] : memref<1x16xf32, #tpu.memory_space<vmem>>, vector<1x16xf32>
      %cst_9 = arith.constant dense<0.000000e+00> : vector<16xf32>
      %13 = vector.multi_reduction <add>, %8, %cst_9 [0] : vector<256x16xf32> to vector<16xf32>
      %14 = vector.shape_cast %13 : vector<16xf32> to vector<1x16xf32>
      %15 = arith.addf %12, %14 : vector<1x16xf32>
      %c0_10 = arith.constant 0 : index
      %c0_11 = arith.constant 0 : index
      %16 = vector.load %arg7[%c0_10, %c0_11] : memref<1x16xf32, #tpu.memory_space<vmem>>, vector<1x16xf32>
      tpu.vector_store %arg7[%c0_10, %c0_11], %15 {strides = array<i32>} : memref<1x16xf32, #tpu.memory_space<vmem>>, vector<1x16xf32>,
      %c0_12 = arith.constant 0 : index
      %c0_13 = arith.constant 0 : index
      %17 = vector.load %arg8[%c0_12, %c0_13] : memref<1x16xf32, #tpu.memory_space<vmem>>, vector<1x16xf32>
      %18 = arith.mulf %8, %8 : vector<256x16xf32>
      %cst_14 = arith.constant dense<0.000000e+00> : vector<16xf32>
      %19 = vector.multi_reduction <add>, %18, %cst_14 [0] : vector<256x16xf32> to vector<16xf32>
      %20 = vector.shape_cast %19 : vector<16xf32> to vector<1x16xf32>
      %21 = arith.addf %17, %20 : vector<1x16xf32>
      %c0_15 = arith.constant 0 : index
      %c0_16 = arith.constant 0 : index
      %22 = vector.load %arg8[%c0_15, %c0_16] : memref<1x16xf32, #tpu.memory_space<vmem>>, vector<1x16xf32>
      tpu.vector_store %arg8[%c0_15, %c0_16], %21 {strides = array<i32>} : memref<1x16xf32, #tpu.memory_space<vmem>>, vector<1x16xf32>,
      %23 = arith.index_cast %arg1 : i32 to index
      %c0_17 = arith.constant 0 : index
      %c0_18 = arith.constant 0 : index
      %24 = vector.load %arg9[%23, %c0_17, %c0_18] : memref<1x256x16xf32, #tpu.memory_space<vmem>>, vector<1x256x16xf32>
      %25 = vector.shape_cast %24 : vector<1x256x16xf32> to vector<256x16xf32>
      %26 = vector.shape_cast %8 : vector<256x16xf32> to vector<1x256x16xf32>
      tpu.vector_store %arg9[%23, %c0_17, %c0_18], %26 {strides = array<i32>} : memref<1x256x16xf32, #tpu.memory_space<vmem>>, vector<1x256x16xf32>,
    } else {
    }
    %c1_i32 = arith.constant 1 : i32
    %3 = arith.cmpi eq, %arg0, %c1_i32 : i32
    %4 = arith.extui %3 : i1 to i32
    %c0_i32_1 = arith.constant 0 : i32
    %5 = arith.cmpi ne, %4, %c0_i32_1 : i32
    scf.if %5 {
      %6 = arith.index_cast %arg1 : i32 to index
      %c0 = arith.constant 0 : index
      %c0_2 = arith.constant 0 : index
      %7 = vector.load %arg9[%6, %c0, %c0_2] : memref<1x256x16xf32, #tpu.memory_space<vmem>>, vector<1x256x16xf32>
      %8 = vector.shape_cast %7 : vector<1x256x16xf32> to vector<256x16xf32>
      %c0_3 = arith.constant 0 : index
      %c0_4 = arith.constant 0 : index
      %9 = vector.load %arg7[%c0_3, %c0_4] : memref<1x16xf32, #tpu.memory_space<vmem>>, vector<1x16xf32>
      %cst = arith.constant 3.906250e-03 : f32
      %10 = vector.broadcast %cst : f32 to vector<1x16xf32>
      %11 = arith.mulf %9, %10 : vector<1x16xf32>
      %c0_5 = arith.constant 0 : index
      %c0_6 = arith.constant 0 : index
      %12 = vector.load %arg8[%c0_5, %c0_6] : memref<1x16xf32, #tpu.memory_space<vmem>>, vector<1x16xf32>
      %cst_7 = arith.constant 3.906250e-03 : f32
      %13 = vector.broadcast %cst_7 : f32 to vector<1x16xf32>
      %14 = arith.mulf %12, %13 : vector<1x16xf32>
      %15 = arith.mulf %11, %11 : vector<1x16xf32>
      %16 = arith.subf %14, %15 : vector<1x16xf32>
      %cst_8 = arith.constant 0.000000e+00 : f32
      %17 = vector.broadcast %cst_8 : f32 to vector<1x16xf32>
      %18 = arith.maximumf %16, %17 : vector<1x16xf32>
      %c0_9 = arith.constant 0 : index
      %c0_10 = arith.constant 0 : index
      %19 = vector.load %arg4[%c0_9, %c0_10] : memref<1x16xf32, #tpu.memory_space<vmem>>, vector<1x16xf32>
      %cst_11 = arith.constant 9.99999974E-6 : f32
      %20 = vector.broadcast %cst_11 : f32 to vector<1x16xf32>
      %21 = arith.addf %18, %20 : vector<1x16xf32>
      %22 = math.rsqrt %21 : vector<1x16xf32>
      %23 = arith.mulf %19, %22 : vector<1x16xf32>
      %24 = vector.broadcast %11 : vector<1x16xf32> to vector<256x16xf32>
      %25 = arith.subf %8, %24 : vector<256x16xf32>
      %26 = vector.broadcast %23 : vector<1x16xf32> to vector<256x16xf32>
      %27 = arith.mulf %25, %26 : vector<256x16xf32>
      %c0_12 = arith.constant 0 : index
      %c0_13 = arith.constant 0 : index
      %28 = vector.load %arg5[%c0_12, %c0_13] : memref<1x16xf32, #tpu.memory_space<vmem>>, vector<1x16xf32>
      %29 = vector.broadcast %28 : vector<1x16xf32> to vector<256x16xf32>
      %30 = arith.addf %27, %29 : vector<256x16xf32>
      %cst_14 = arith.constant 0.000000e+00 : f32
      %31 = vector.broadcast %cst_14 : f32 to vector<256x16xf32>
      %32 = arith.maximumf %30, %31 : vector<256x16xf32>
      %33 = arith.truncf %32 : vector<256x16xf32> to vector<256x16xbf16>
      %c0_15 = arith.constant 0 : index
      %c0_16 = arith.constant 0 : index
      %34 = vector.load %arg6[%c0_15, %c0_16] : memref<256x16xbf16, #tpu.memory_space<vmem>>, vector<256x16xbf16>
      tpu.vector_store %arg6[%c0_15, %c0_16], %33 {strides = array<i32>} : memref<256x16xbf16, #tpu.memory_space<vmem>>, vector<256x16xbf16>,
    } else {
    }
    return
  }
  func.func @transform_0(%arg0: i32, %arg1: i32) -> (i32, i32) {
    %c1_i32 = arith.constant 1 : i32
    %0 = arith.subi %c1_i32, %arg0 : i32
    %1 = arith.muli %0, %arg1 : i32
    %c0_i32 = arith.constant 0 : i32
    %c0_i32_0 = arith.constant 0 : i32
    return %1, %c0_i32 : i32, i32
  }
  func.func @transform_1(%arg0: i32, %arg1: i32) -> (i32, i32) {
    %c0_i32 = arith.constant 0 : i32
    %c0_i32_0 = arith.constant 0 : i32
    %c0_i32_1 = arith.constant 0 : i32
    return %c0_i32, %c0_i32_0 : i32, i32
  }
  func.func @transform_2(%arg0: i32, %arg1: i32) -> (i32, i32) {
    %c0_i32 = arith.constant 0 : i32
    %c0_i32_0 = arith.constant 0 : i32
    %c0_i32_1 = arith.constant 0 : i32
    return %c0_i32, %c0_i32_0 : i32, i32
  }
  func.func @transform_3(%arg0: i32, %arg1: i32) -> (i32, i32) {
    %c0_i32 = arith.constant 0 : i32
    %c0_i32_0 = arith.constant 0 : i32
    %c0_i32_1 = arith.constant 0 : i32
    return %c0_i32, %c0_i32_0 : i32, i32
  }
  func.func @transform_4(%arg0: i32, %arg1: i32) -> (i32, i32) {
    %0 = arith.muli %arg0, %arg1 : i32
    %c0_i32 = arith.constant 0 : i32
    %c0_i32_0 = arith.constant 0 : i32
    return %0, %c0_i32 : i32, i32
  }
}

module attributes {stable_mosaic.version = 11 : i64} {
  func.func @_conv_bn_kernel(%arg0: i32, %arg1: i32, %arg2: memref<64x144xbf16, #tpu.memory_space<vmem>>, %arg3: memref<144x32xbf16, #tpu.memory_space<vmem>>, %arg4: memref<1x32xf32, #tpu.memory_space<vmem>>, %arg5: memref<1x32xf32, #tpu.memory_space<vmem>>, %arg6: memref<64x32xbf16, #tpu.memory_space<vmem>>, %arg7: memref<1x32xf32, #tpu.memory_space<vmem>>, %arg8: memref<1x32xf32, #tpu.memory_space<vmem>>, %arg9: memref<1x64x32xf32, #tpu.memory_space<vmem>>) attributes {dimension_semantics = [#tpu.dimension_semantics<arbitrary>, #tpu.dimension_semantics<arbitrary>], iteration_bounds = array<i64: 2, 1>, scalar_prefetch = 0 : i64, scratch_operands = 3 : i64, tpu.core_type = #tpu.core_type<tc>, window_params = [{transform_indices = @transform_0, window_bounds = array<i64: 64, 144>}, {pipeline_mode = #tpu.pipeline_mode<synchronous>, transform_indices = @transform_1, window_bounds = array<i64: 144, 32>}, {pipeline_mode = #tpu.pipeline_mode<synchronous>, transform_indices = @transform_2, window_bounds = array<i64: 1, 32>}, {pipeline_mode = #tpu.pipeline_mode<synchronous>, transform_indices = @transform_3, window_bounds = array<i64: 1, 32>}, {transform_indices = @transform_4, window_bounds = array<i64: 64, 32>}]} {
    %c0_i32 = arith.constant 0 : i32
    %0 = arith.cmpi eq, %arg0, %c0_i32 : i32
    %1 = arith.extui %0 : i1 to i32
    %c0_i32_0 = arith.constant 0 : i32
    %2 = arith.cmpi ne, %1, %c0_i32_0 : i32
    scf.if %2 {
      %c0 = arith.constant 0 : index
      %c0_2 = arith.constant 0 : index
      %6 = vector.load %arg2[%c0, %c0_2] : memref<64x144xbf16, #tpu.memory_space<vmem>>, vector<64x144xbf16>
      %c0_3 = arith.constant 0 : index
      %c0_4 = arith.constant 0 : index
      %7 = vector.load %arg3[%c0_3, %c0_4] : memref<144x32xbf16, #tpu.memory_space<vmem>>, vector<144x32xbf16>
      %cst = arith.constant dense<0.000000e+00> : vector<64x32xf32>
      %8 = tpu.matmul %6, %7, %cst {dimension_numbers = #tpu.dot_dimension_numbers<[1], [0], [0], [1], [0, 0, 1, 1], [], []>} : vector<64x144xbf16>, vector<144x32xbf16>, vector<64x32xf32> -> vector<64x32xf32>
      %c0_i32_5 = arith.constant 0 : i32
      %9 = arith.cmpi eq, %arg1, %c0_i32_5 : i32
      %10 = arith.extui %9 : i1 to i32
      %c0_i32_6 = arith.constant 0 : i32
      %11 = arith.cmpi ne, %10, %c0_i32_6 : i32
      scf.if %11 {
        %cst_19 = arith.constant 0.000000e+00 : f32
        %27 = vector.broadcast %cst_19 : f32 to vector<1x32xf32>
        %c0_20 = arith.constant 0 : index
        %c0_21 = arith.constant 0 : index
        %28 = vector.load %arg7[%c0_20, %c0_21] : memref<1x32xf32, #tpu.memory_space<vmem>>, vector<1x32xf32>
        tpu.vector_store %arg7[%c0_20, %c0_21], %27 {strides = array<i32>} : memref<1x32xf32, #tpu.memory_space<vmem>>, vector<1x32xf32>,
        %cst_22 = arith.constant 0.000000e+00 : f32
        %29 = vector.broadcast %cst_22 : f32 to vector<1x32xf32>
        %c0_23 = arith.constant 0 : index
        %c0_24 = arith.constant 0 : index
        %30 = vector.load %arg8[%c0_23, %c0_24] : memref<1x32xf32, #tpu.memory_space<vmem>>, vector<1x32xf32>
        tpu.vector_store %arg8[%c0_23, %c0_24], %29 {strides = array<i32>} : memref<1x32xf32, #tpu.memory_space<vmem>>, vector<1x32xf32>,
      } else {
      }
      %c0_7 = arith.constant 0 : index
      %c0_8 = arith.constant 0 : index
      %12 = vector.load %arg7[%c0_7, %c0_8] : memref<1x32xf32, #tpu.memory_space<vmem>>, vector<1x32xf32>
      %cst_9 = arith.constant dense<0.000000e+00> : vector<32xf32>
      %13 = vector.multi_reduction <add>, %8, %cst_9 [0] : vector<64x32xf32> to vector<32xf32>
      %14 = vector.shape_cast %13 : vector<32xf32> to vector<1x32xf32>
      %15 = arith.addf %12, %14 : vector<1x32xf32>
      %c0_10 = arith.constant 0 : index
      %c0_11 = arith.constant 0 : index
      %16 = vector.load %arg7[%c0_10, %c0_11] : memref<1x32xf32, #tpu.memory_space<vmem>>, vector<1x32xf32>
      tpu.vector_store %arg7[%c0_10, %c0_11], %15 {strides = array<i32>} : memref<1x32xf32, #tpu.memory_space<vmem>>, vector<1x32xf32>,
      %c0_12 = arith.constant 0 : index
      %c0_13 = arith.constant 0 : index
      %17 = vector.load %arg8[%c0_12, %c0_13] : memref<1x32xf32, #tpu.memory_space<vmem>>, vector<1x32xf32>
      %18 = arith.mulf %8, %8 : vector<64x32xf32>
      %cst_14 = arith.constant dense<0.000000e+00> : vector<32xf32>
      %19 = vector.multi_reduction <add>, %18, %cst_14 [0] : vector<64x32xf32> to vector<32xf32>
      %20 = vector.shape_cast %19 : vector<32xf32> to vector<1x32xf32>
      %21 = arith.addf %17, %20 : vector<1x32xf32>
      %c0_15 = arith.constant 0 : index
      %c0_16 = arith.constant 0 : index
      %22 = vector.load %arg8[%c0_15, %c0_16] : memref<1x32xf32, #tpu.memory_space<vmem>>, vector<1x32xf32>
      tpu.vector_store %arg8[%c0_15, %c0_16], %21 {strides = array<i32>} : memref<1x32xf32, #tpu.memory_space<vmem>>, vector<1x32xf32>,
      %23 = arith.index_cast %arg1 : i32 to index
      %c0_17 = arith.constant 0 : index
      %c0_18 = arith.constant 0 : index
      %24 = vector.load %arg9[%23, %c0_17, %c0_18] : memref<1x64x32xf32, #tpu.memory_space<vmem>>, vector<1x64x32xf32>
      %25 = vector.shape_cast %24 : vector<1x64x32xf32> to vector<64x32xf32>
      %26 = vector.shape_cast %8 : vector<64x32xf32> to vector<1x64x32xf32>
      tpu.vector_store %arg9[%23, %c0_17, %c0_18], %26 {strides = array<i32>} : memref<1x64x32xf32, #tpu.memory_space<vmem>>, vector<1x64x32xf32>,
    } else {
    }
    %c1_i32 = arith.constant 1 : i32
    %3 = arith.cmpi eq, %arg0, %c1_i32 : i32
    %4 = arith.extui %3 : i1 to i32
    %c0_i32_1 = arith.constant 0 : i32
    %5 = arith.cmpi ne, %4, %c0_i32_1 : i32
    scf.if %5 {
      %6 = arith.index_cast %arg1 : i32 to index
      %c0 = arith.constant 0 : index
      %c0_2 = arith.constant 0 : index
      %7 = vector.load %arg9[%6, %c0, %c0_2] : memref<1x64x32xf32, #tpu.memory_space<vmem>>, vector<1x64x32xf32>
      %8 = vector.shape_cast %7 : vector<1x64x32xf32> to vector<64x32xf32>
      %c0_3 = arith.constant 0 : index
      %c0_4 = arith.constant 0 : index
      %9 = vector.load %arg7[%c0_3, %c0_4] : memref<1x32xf32, #tpu.memory_space<vmem>>, vector<1x32xf32>
      %cst = arith.constant 1.562500e-02 : f32
      %10 = vector.broadcast %cst : f32 to vector<1x32xf32>
      %11 = arith.mulf %9, %10 : vector<1x32xf32>
      %c0_5 = arith.constant 0 : index
      %c0_6 = arith.constant 0 : index
      %12 = vector.load %arg8[%c0_5, %c0_6] : memref<1x32xf32, #tpu.memory_space<vmem>>, vector<1x32xf32>
      %cst_7 = arith.constant 1.562500e-02 : f32
      %13 = vector.broadcast %cst_7 : f32 to vector<1x32xf32>
      %14 = arith.mulf %12, %13 : vector<1x32xf32>
      %15 = arith.mulf %11, %11 : vector<1x32xf32>
      %16 = arith.subf %14, %15 : vector<1x32xf32>
      %cst_8 = arith.constant 0.000000e+00 : f32
      %17 = vector.broadcast %cst_8 : f32 to vector<1x32xf32>
      %18 = arith.maximumf %16, %17 : vector<1x32xf32>
      %c0_9 = arith.constant 0 : index
      %c0_10 = arith.constant 0 : index
      %19 = vector.load %arg4[%c0_9, %c0_10] : memref<1x32xf32, #tpu.memory_space<vmem>>, vector<1x32xf32>
      %cst_11 = arith.constant 9.99999974E-6 : f32
      %20 = vector.broadcast %cst_11 : f32 to vector<1x32xf32>
      %21 = arith.addf %18, %20 : vector<1x32xf32>
      %22 = math.rsqrt %21 : vector<1x32xf32>
      %23 = arith.mulf %19, %22 : vector<1x32xf32>
      %24 = vector.broadcast %11 : vector<1x32xf32> to vector<64x32xf32>
      %25 = arith.subf %8, %24 : vector<64x32xf32>
      %26 = vector.broadcast %23 : vector<1x32xf32> to vector<64x32xf32>
      %27 = arith.mulf %25, %26 : vector<64x32xf32>
      %c0_12 = arith.constant 0 : index
      %c0_13 = arith.constant 0 : index
      %28 = vector.load %arg5[%c0_12, %c0_13] : memref<1x32xf32, #tpu.memory_space<vmem>>, vector<1x32xf32>
      %29 = vector.broadcast %28 : vector<1x32xf32> to vector<64x32xf32>
      %30 = arith.addf %27, %29 : vector<64x32xf32>
      %cst_14 = arith.constant 0.000000e+00 : f32
      %31 = vector.broadcast %cst_14 : f32 to vector<64x32xf32>
      %32 = arith.maximumf %30, %31 : vector<64x32xf32>
      %33 = arith.truncf %32 : vector<64x32xf32> to vector<64x32xbf16>
      %c0_15 = arith.constant 0 : index
      %c0_16 = arith.constant 0 : index
      %34 = vector.load %arg6[%c0_15, %c0_16] : memref<64x32xbf16, #tpu.memory_space<vmem>>, vector<64x32xbf16>
      tpu.vector_store %arg6[%c0_15, %c0_16], %33 {strides = array<i32>} : memref<64x32xbf16, #tpu.memory_space<vmem>>, vector<64x32xbf16>,
    } else {
    }
    return
  }
  func.func @transform_0(%arg0: i32, %arg1: i32) -> (i32, i32) {
    %c1_i32 = arith.constant 1 : i32
    %0 = arith.subi %c1_i32, %arg0 : i32
    %1 = arith.muli %0, %arg1 : i32
    %c0_i32 = arith.constant 0 : i32
    %c0_i32_0 = arith.constant 0 : i32
    return %1, %c0_i32 : i32, i32
  }
  func.func @transform_1(%arg0: i32, %arg1: i32) -> (i32, i32) {
    %c0_i32 = arith.constant 0 : i32
    %c0_i32_0 = arith.constant 0 : i32
    %c0_i32_1 = arith.constant 0 : i32
    return %c0_i32, %c0_i32_0 : i32, i32
  }
  func.func @transform_2(%arg0: i32, %arg1: i32) -> (i32, i32) {
    %c0_i32 = arith.constant 0 : i32
    %c0_i32_0 = arith.constant 0 : i32
    %c0_i32_1 = arith.constant 0 : i32
    return %c0_i32, %c0_i32_0 : i32, i32
  }
  func.func @transform_3(%arg0: i32, %arg1: i32) -> (i32, i32) {
    %c0_i32 = arith.constant 0 : i32
    %c0_i32_0 = arith.constant 0 : i32
    %c0_i32_1 = arith.constant 0 : i32
    return %c0_i32, %c0_i32_0 : i32, i32
  }
  func.func @transform_4(%arg0: i32, %arg1: i32) -> (i32, i32) {
    %0 = arith.muli %arg0, %arg1 : i32
    %c0_i32 = arith.constant 0 : i32
    %c0_i32_0 = arith.constant 0 : i32
    return %0, %c0_i32 : i32, i32
  }
}

module attributes {stable_mosaic.version = 11 : i64} {
  func.func @_conv_bn_kernel(%arg0: i32, %arg1: i32, %arg2: memref<16x288xbf16, #tpu.memory_space<vmem>>, %arg3: memref<288x64xbf16, #tpu.memory_space<vmem>>, %arg4: memref<1x64xf32, #tpu.memory_space<vmem>>, %arg5: memref<1x64xf32, #tpu.memory_space<vmem>>, %arg6: memref<16x64xbf16, #tpu.memory_space<vmem>>, %arg7: memref<1x64xf32, #tpu.memory_space<vmem>>, %arg8: memref<1x64xf32, #tpu.memory_space<vmem>>, %arg9: memref<1x16x64xf32, #tpu.memory_space<vmem>>) attributes {dimension_semantics = [#tpu.dimension_semantics<arbitrary>, #tpu.dimension_semantics<arbitrary>], iteration_bounds = array<i64: 2, 1>, scalar_prefetch = 0 : i64, scratch_operands = 3 : i64, tpu.core_type = #tpu.core_type<tc>, window_params = [{transform_indices = @transform_0, window_bounds = array<i64: 16, 288>}, {pipeline_mode = #tpu.pipeline_mode<synchronous>, transform_indices = @transform_1, window_bounds = array<i64: 288, 64>}, {pipeline_mode = #tpu.pipeline_mode<synchronous>, transform_indices = @transform_2, window_bounds = array<i64: 1, 64>}, {pipeline_mode = #tpu.pipeline_mode<synchronous>, transform_indices = @transform_3, window_bounds = array<i64: 1, 64>}, {transform_indices = @transform_4, window_bounds = array<i64: 16, 64>}]} {
    %c0_i32 = arith.constant 0 : i32
    %0 = arith.cmpi eq, %arg0, %c0_i32 : i32
    %1 = arith.extui %0 : i1 to i32
    %c0_i32_0 = arith.constant 0 : i32
    %2 = arith.cmpi ne, %1, %c0_i32_0 : i32
    scf.if %2 {
      %c0 = arith.constant 0 : index
      %c0_2 = arith.constant 0 : index
      %6 = vector.load %arg2[%c0, %c0_2] : memref<16x288xbf16, #tpu.memory_space<vmem>>, vector<16x288xbf16>
      %c0_3 = arith.constant 0 : index
      %c0_4 = arith.constant 0 : index
      %7 = vector.load %arg3[%c0_3, %c0_4] : memref<288x64xbf16, #tpu.memory_space<vmem>>, vector<288x64xbf16>
      %cst = arith.constant dense<0.000000e+00> : vector<16x64xf32>
      %8 = tpu.matmul %6, %7, %cst {dimension_numbers = #tpu.dot_dimension_numbers<[1], [0], [0], [1], [0, 0, 1, 1], [], []>} : vector<16x288xbf16>, vector<288x64xbf16>, vector<16x64xf32> -> vector<16x64xf32>
      %c0_i32_5 = arith.constant 0 : i32
      %9 = arith.cmpi eq, %arg1, %c0_i32_5 : i32
      %10 = arith.extui %9 : i1 to i32
      %c0_i32_6 = arith.constant 0 : i32
      %11 = arith.cmpi ne, %10, %c0_i32_6 : i32
      scf.if %11 {
        %cst_19 = arith.constant 0.000000e+00 : f32
        %27 = vector.broadcast %cst_19 : f32 to vector<1x64xf32>
        %c0_20 = arith.constant 0 : index
        %c0_21 = arith.constant 0 : index
        %28 = vector.load %arg7[%c0_20, %c0_21] : memref<1x64xf32, #tpu.memory_space<vmem>>, vector<1x64xf32>
        tpu.vector_store %arg7[%c0_20, %c0_21], %27 {strides = array<i32>} : memref<1x64xf32, #tpu.memory_space<vmem>>, vector<1x64xf32>,
        %cst_22 = arith.constant 0.000000e+00 : f32
        %29 = vector.broadcast %cst_22 : f32 to vector<1x64xf32>
        %c0_23 = arith.constant 0 : index
        %c0_24 = arith.constant 0 : index
        %30 = vector.load %arg8[%c0_23, %c0_24] : memref<1x64xf32, #tpu.memory_space<vmem>>, vector<1x64xf32>
        tpu.vector_store %arg8[%c0_23, %c0_24], %29 {strides = array<i32>} : memref<1x64xf32, #tpu.memory_space<vmem>>, vector<1x64xf32>,
      } else {
      }
      %c0_7 = arith.constant 0 : index
      %c0_8 = arith.constant 0 : index
      %12 = vector.load %arg7[%c0_7, %c0_8] : memref<1x64xf32, #tpu.memory_space<vmem>>, vector<1x64xf32>
      %cst_9 = arith.constant dense<0.000000e+00> : vector<64xf32>
      %13 = vector.multi_reduction <add>, %8, %cst_9 [0] : vector<16x64xf32> to vector<64xf32>
      %14 = vector.shape_cast %13 : vector<64xf32> to vector<1x64xf32>
      %15 = arith.addf %12, %14 : vector<1x64xf32>
      %c0_10 = arith.constant 0 : index
      %c0_11 = arith.constant 0 : index
      %16 = vector.load %arg7[%c0_10, %c0_11] : memref<1x64xf32, #tpu.memory_space<vmem>>, vector<1x64xf32>
      tpu.vector_store %arg7[%c0_10, %c0_11], %15 {strides = array<i32>} : memref<1x64xf32, #tpu.memory_space<vmem>>, vector<1x64xf32>,
      %c0_12 = arith.constant 0 : index
      %c0_13 = arith.constant 0 : index
      %17 = vector.load %arg8[%c0_12, %c0_13] : memref<1x64xf32, #tpu.memory_space<vmem>>, vector<1x64xf32>
      %18 = arith.mulf %8, %8 : vector<16x64xf32>
      %cst_14 = arith.constant dense<0.000000e+00> : vector<64xf32>
      %19 = vector.multi_reduction <add>, %18, %cst_14 [0] : vector<16x64xf32> to vector<64xf32>
      %20 = vector.shape_cast %19 : vector<64xf32> to vector<1x64xf32>
      %21 = arith.addf %17, %20 : vector<1x64xf32>
      %c0_15 = arith.constant 0 : index
      %c0_16 = arith.constant 0 : index
      %22 = vector.load %arg8[%c0_15, %c0_16] : memref<1x64xf32, #tpu.memory_space<vmem>>, vector<1x64xf32>
      tpu.vector_store %arg8[%c0_15, %c0_16], %21 {strides = array<i32>} : memref<1x64xf32, #tpu.memory_space<vmem>>, vector<1x64xf32>,
      %23 = arith.index_cast %arg1 : i32 to index
      %c0_17 = arith.constant 0 : index
      %c0_18 = arith.constant 0 : index
      %24 = vector.load %arg9[%23, %c0_17, %c0_18] : memref<1x16x64xf32, #tpu.memory_space<vmem>>, vector<1x16x64xf32>
      %25 = vector.shape_cast %24 : vector<1x16x64xf32> to vector<16x64xf32>
      %26 = vector.shape_cast %8 : vector<16x64xf32> to vector<1x16x64xf32>
      tpu.vector_store %arg9[%23, %c0_17, %c0_18], %26 {strides = array<i32>} : memref<1x16x64xf32, #tpu.memory_space<vmem>>, vector<1x16x64xf32>,
    } else {
    }
    %c1_i32 = arith.constant 1 : i32
    %3 = arith.cmpi eq, %arg0, %c1_i32 : i32
    %4 = arith.extui %3 : i1 to i32
    %c0_i32_1 = arith.constant 0 : i32
    %5 = arith.cmpi ne, %4, %c0_i32_1 : i32
    scf.if %5 {
      %6 = arith.index_cast %arg1 : i32 to index
      %c0 = arith.constant 0 : index
      %c0_2 = arith.constant 0 : index
      %7 = vector.load %arg9[%6, %c0, %c0_2] : memref<1x16x64xf32, #tpu.memory_space<vmem>>, vector<1x16x64xf32>
      %8 = vector.shape_cast %7 : vector<1x16x64xf32> to vector<16x64xf32>
      %c0_3 = arith.constant 0 : index
      %c0_4 = arith.constant 0 : index
      %9 = vector.load %arg7[%c0_3, %c0_4] : memref<1x64xf32, #tpu.memory_space<vmem>>, vector<1x64xf32>
      %cst = arith.constant 6.250000e-02 : f32
      %10 = vector.broadcast %cst : f32 to vector<1x64xf32>
      %11 = arith.mulf %9, %10 : vector<1x64xf32>
      %c0_5 = arith.constant 0 : index
      %c0_6 = arith.constant 0 : index
      %12 = vector.load %arg8[%c0_5, %c0_6] : memref<1x64xf32, #tpu.memory_space<vmem>>, vector<1x64xf32>
      %cst_7 = arith.constant 6.250000e-02 : f32
      %13 = vector.broadcast %cst_7 : f32 to vector<1x64xf32>
      %14 = arith.mulf %12, %13 : vector<1x64xf32>
      %15 = arith.mulf %11, %11 : vector<1x64xf32>
      %16 = arith.subf %14, %15 : vector<1x64xf32>
      %cst_8 = arith.constant 0.000000e+00 : f32
      %17 = vector.broadcast %cst_8 : f32 to vector<1x64xf32>
      %18 = arith.maximumf %16, %17 : vector<1x64xf32>
      %c0_9 = arith.constant 0 : index
      %c0_10 = arith.constant 0 : index
      %19 = vector.load %arg4[%c0_9, %c0_10] : memref<1x64xf32, #tpu.memory_space<vmem>>, vector<1x64xf32>
      %cst_11 = arith.constant 9.99999974E-6 : f32
      %20 = vector.broadcast %cst_11 : f32 to vector<1x64xf32>
      %21 = arith.addf %18, %20 : vector<1x64xf32>
      %22 = math.rsqrt %21 : vector<1x64xf32>
      %23 = arith.mulf %19, %22 : vector<1x64xf32>
      %24 = vector.broadcast %11 : vector<1x64xf32> to vector<16x64xf32>
      %25 = arith.subf %8, %24 : vector<16x64xf32>
      %26 = vector.broadcast %23 : vector<1x64xf32> to vector<16x64xf32>
      %27 = arith.mulf %25, %26 : vector<16x64xf32>
      %c0_12 = arith.constant 0 : index
      %c0_13 = arith.constant 0 : index
      %28 = vector.load %arg5[%c0_12, %c0_13] : memref<1x64xf32, #tpu.memory_space<vmem>>, vector<1x64xf32>
      %29 = vector.broadcast %28 : vector<1x64xf32> to vector<16x64xf32>
      %30 = arith.addf %27, %29 : vector<16x64xf32>
      %cst_14 = arith.constant 0.000000e+00 : f32
      %31 = vector.broadcast %cst_14 : f32 to vector<16x64xf32>
      %32 = arith.maximumf %30, %31 : vector<16x64xf32>
      %33 = arith.truncf %32 : vector<16x64xf32> to vector<16x64xbf16>
      %c0_15 = arith.constant 0 : index
      %c0_16 = arith.constant 0 : index
      %34 = vector.load %arg6[%c0_15, %c0_16] : memref<16x64xbf16, #tpu.memory_space<vmem>>, vector<16x64xbf16>
      tpu.vector_store %arg6[%c0_15, %c0_16], %33 {strides = array<i32>} : memref<16x64xbf16, #tpu.memory_space<vmem>>, vector<16x64xbf16>,
    } else {
    }
    return
  }
  func.func @transform_0(%arg0: i32, %arg1: i32) -> (i32, i32) {
    %c1_i32 = arith.constant 1 : i32
    %0 = arith.subi %c1_i32, %arg0 : i32
    %1 = arith.muli %0, %arg1 : i32
    %c0_i32 = arith.constant 0 : i32
    %c0_i32_0 = arith.constant 0 : i32
    return %1, %c0_i32 : i32, i32
  }
  func.func @transform_1(%arg0: i32, %arg1: i32) -> (i32, i32) {
    %c0_i32 = arith.constant 0 : i32
    %c0_i32_0 = arith.constant 0 : i32
    %c0_i32_1 = arith.constant 0 : i32
    return %c0_i32, %c0_i32_0 : i32, i32
  }
  func.func @transform_2(%arg0: i32, %arg1: i32) -> (i32, i32) {
    %c0_i32 = arith.constant 0 : i32
    %c0_i32_0 = arith.constant 0 : i32
    %c0_i32_1 = arith.constant 0 : i32
    return %c0_i32, %c0_i32_0 : i32, i32
  }
  func.func @transform_3(%arg0: i32, %arg1: i32) -> (i32, i32) {
    %c0_i32 = arith.constant 0 : i32
    %c0_i32_0 = arith.constant 0 : i32
    %c0_i32_1 = arith.constant 0 : i32
    return %c0_i32, %c0_i32_0 : i32, i32
  }
  func.func @transform_4(%arg0: i32, %arg1: i32) -> (i32, i32) {
    %0 = arith.muli %arg0, %arg1 : i32
    %c0_i32 = arith.constant 0 : i32
    %c0_i32_0 = arith.constant 0 : i32
    return %0, %c0_i32 : i32, i32
  }
}

module attributes {stable_mosaic.version = 11 : i64} {
  func.func @_conv_bn_kernel(%arg0: i32, %arg1: i32, %arg2: memref<4x576xbf16, #tpu.memory_space<vmem>>, %arg3: memref<576x128xbf16, #tpu.memory_space<vmem>>, %arg4: memref<1x128xf32, #tpu.memory_space<vmem>>, %arg5: memref<1x128xf32, #tpu.memory_space<vmem>>, %arg6: memref<4x128xbf16, #tpu.memory_space<vmem>>, %arg7: memref<1x128xf32, #tpu.memory_space<vmem>>, %arg8: memref<1x128xf32, #tpu.memory_space<vmem>>, %arg9: memref<1x4x128xf32, #tpu.memory_space<vmem>>) attributes {dimension_semantics = [#tpu.dimension_semantics<arbitrary>, #tpu.dimension_semantics<arbitrary>], iteration_bounds = array<i64: 2, 1>, scalar_prefetch = 0 : i64, scratch_operands = 3 : i64, tpu.core_type = #tpu.core_type<tc>, window_params = [{transform_indices = @transform_0, window_bounds = array<i64: 4, 576>}, {pipeline_mode = #tpu.pipeline_mode<synchronous>, transform_indices = @transform_1, window_bounds = array<i64: 576, 128>}, {pipeline_mode = #tpu.pipeline_mode<synchronous>, transform_indices = @transform_2, window_bounds = array<i64: 1, 128>}, {pipeline_mode = #tpu.pipeline_mode<synchronous>, transform_indices = @transform_3, window_bounds = array<i64: 1, 128>}, {transform_indices = @transform_4, window_bounds = array<i64: 4, 128>}]} {
    %c0_i32 = arith.constant 0 : i32
    %0 = arith.cmpi eq, %arg0, %c0_i32 : i32
    %1 = arith.extui %0 : i1 to i32
    %c0_i32_0 = arith.constant 0 : i32
    %2 = arith.cmpi ne, %1, %c0_i32_0 : i32
    scf.if %2 {
      %c0 = arith.constant 0 : index
      %c0_2 = arith.constant 0 : index
      %6 = vector.load %arg2[%c0, %c0_2] : memref<4x576xbf16, #tpu.memory_space<vmem>>, vector<4x576xbf16>
      %c0_3 = arith.constant 0 : index
      %c0_4 = arith.constant 0 : index
      %7 = vector.load %arg3[%c0_3, %c0_4] : memref<576x128xbf16, #tpu.memory_space<vmem>>, vector<576x128xbf16>
      %cst = arith.constant dense<0.000000e+00> : vector<4x128xf32>
      %8 = tpu.matmul %6, %7, %cst {dimension_numbers = #tpu.dot_dimension_numbers<[1], [0], [0], [1], [0, 0, 1, 1], [], []>} : vector<4x576xbf16>, vector<576x128xbf16>, vector<4x128xf32> -> vector<4x128xf32>
      %c0_i32_5 = arith.constant 0 : i32
      %9 = arith.cmpi eq, %arg1, %c0_i32_5 : i32
      %10 = arith.extui %9 : i1 to i32
      %c0_i32_6 = arith.constant 0 : i32
      %11 = arith.cmpi ne, %10, %c0_i32_6 : i32
      scf.if %11 {
        %cst_19 = arith.constant 0.000000e+00 : f32
        %27 = vector.broadcast %cst_19 : f32 to vector<1x128xf32>
        %c0_20 = arith.constant 0 : index
        %c0_21 = arith.constant 0 : index
        %28 = vector.load %arg7[%c0_20, %c0_21] : memref<1x128xf32, #tpu.memory_space<vmem>>, vector<1x128xf32>
        tpu.vector_store %arg7[%c0_20, %c0_21], %27 {strides = array<i32>} : memref<1x128xf32, #tpu.memory_space<vmem>>, vector<1x128xf32>,
        %cst_22 = arith.constant 0.000000e+00 : f32
        %29 = vector.broadcast %cst_22 : f32 to vector<1x128xf32>
        %c0_23 = arith.constant 0 : index
        %c0_24 = arith.constant 0 : index
        %30 = vector.load %arg8[%c0_23, %c0_24] : memref<1x128xf32, #tpu.memory_space<vmem>>, vector<1x128xf32>
        tpu.vector_store %arg8[%c0_23, %c0_24], %29 {strides = array<i32>} : memref<1x128xf32, #tpu.memory_space<vmem>>, vector<1x128xf32>,
      } else {
      }
      %c0_7 = arith.constant 0 : index
      %c0_8 = arith.constant 0 : index
      %12 = vector.load %arg7[%c0_7, %c0_8] : memref<1x128xf32, #tpu.memory_space<vmem>>, vector<1x128xf32>
      %cst_9 = arith.constant dense<0.000000e+00> : vector<128xf32>
      %13 = vector.multi_reduction <add>, %8, %cst_9 [0] : vector<4x128xf32> to vector<128xf32>
      %14 = vector.shape_cast %13 : vector<128xf32> to vector<1x128xf32>
      %15 = arith.addf %12, %14 : vector<1x128xf32>
      %c0_10 = arith.constant 0 : index
      %c0_11 = arith.constant 0 : index
      %16 = vector.load %arg7[%c0_10, %c0_11] : memref<1x128xf32, #tpu.memory_space<vmem>>, vector<1x128xf32>
      tpu.vector_store %arg7[%c0_10, %c0_11], %15 {strides = array<i32>} : memref<1x128xf32, #tpu.memory_space<vmem>>, vector<1x128xf32>,
      %c0_12 = arith.constant 0 : index
      %c0_13 = arith.constant 0 : index
      %17 = vector.load %arg8[%c0_12, %c0_13] : memref<1x128xf32, #tpu.memory_space<vmem>>, vector<1x128xf32>
      %18 = arith.mulf %8, %8 : vector<4x128xf32>
      %cst_14 = arith.constant dense<0.000000e+00> : vector<128xf32>
      %19 = vector.multi_reduction <add>, %18, %cst_14 [0] : vector<4x128xf32> to vector<128xf32>
      %20 = vector.shape_cast %19 : vector<128xf32> to vector<1x128xf32>
      %21 = arith.addf %17, %20 : vector<1x128xf32>
      %c0_15 = arith.constant 0 : index
      %c0_16 = arith.constant 0 : index
      %22 = vector.load %arg8[%c0_15, %c0_16] : memref<1x128xf32, #tpu.memory_space<vmem>>, vector<1x128xf32>
      tpu.vector_store %arg8[%c0_15, %c0_16], %21 {strides = array<i32>} : memref<1x128xf32, #tpu.memory_space<vmem>>, vector<1x128xf32>,
      %23 = arith.index_cast %arg1 : i32 to index
      %c0_17 = arith.constant 0 : index
      %c0_18 = arith.constant 0 : index
      %24 = vector.load %arg9[%23, %c0_17, %c0_18] : memref<1x4x128xf32, #tpu.memory_space<vmem>>, vector<1x4x128xf32>
      %25 = vector.shape_cast %24 : vector<1x4x128xf32> to vector<4x128xf32>
      %26 = vector.shape_cast %8 : vector<4x128xf32> to vector<1x4x128xf32>
      tpu.vector_store %arg9[%23, %c0_17, %c0_18], %26 {strides = array<i32>} : memref<1x4x128xf32, #tpu.memory_space<vmem>>, vector<1x4x128xf32>,
    } else {
    }
    %c1_i32 = arith.constant 1 : i32
    %3 = arith.cmpi eq, %arg0, %c1_i32 : i32
    %4 = arith.extui %3 : i1 to i32
    %c0_i32_1 = arith.constant 0 : i32
    %5 = arith.cmpi ne, %4, %c0_i32_1 : i32
    scf.if %5 {
      %6 = arith.index_cast %arg1 : i32 to index
      %c0 = arith.constant 0 : index
      %c0_2 = arith.constant 0 : index
      %7 = vector.load %arg9[%6, %c0, %c0_2] : memref<1x4x128xf32, #tpu.memory_space<vmem>>, vector<1x4x128xf32>
      %8 = vector.shape_cast %7 : vector<1x4x128xf32> to vector<4x128xf32>
      %c0_3 = arith.constant 0 : index
      %c0_4 = arith.constant 0 : index
      %9 = vector.load %arg7[%c0_3, %c0_4] : memref<1x128xf32, #tpu.memory_space<vmem>>, vector<1x128xf32>
      %cst = arith.constant 2.500000e-01 : f32
      %10 = vector.broadcast %cst : f32 to vector<1x128xf32>
      %11 = arith.mulf %9, %10 : vector<1x128xf32>
      %c0_5 = arith.constant 0 : index
      %c0_6 = arith.constant 0 : index
      %12 = vector.load %arg8[%c0_5, %c0_6] : memref<1x128xf32, #tpu.memory_space<vmem>>, vector<1x128xf32>
      %cst_7 = arith.constant 2.500000e-01 : f32
      %13 = vector.broadcast %cst_7 : f32 to vector<1x128xf32>
      %14 = arith.mulf %12, %13 : vector<1x128xf32>
      %15 = arith.mulf %11, %11 : vector<1x128xf32>
      %16 = arith.subf %14, %15 : vector<1x128xf32>
      %cst_8 = arith.constant 0.000000e+00 : f32
      %17 = vector.broadcast %cst_8 : f32 to vector<1x128xf32>
      %18 = arith.maximumf %16, %17 : vector<1x128xf32>
      %c0_9 = arith.constant 0 : index
      %c0_10 = arith.constant 0 : index
      %19 = vector.load %arg4[%c0_9, %c0_10] : memref<1x128xf32, #tpu.memory_space<vmem>>, vector<1x128xf32>
      %cst_11 = arith.constant 9.99999974E-6 : f32
      %20 = vector.broadcast %cst_11 : f32 to vector<1x128xf32>
      %21 = arith.addf %18, %20 : vector<1x128xf32>
      %22 = math.rsqrt %21 : vector<1x128xf32>
      %23 = arith.mulf %19, %22 : vector<1x128xf32>
      %24 = vector.broadcast %11 : vector<1x128xf32> to vector<4x128xf32>
      %25 = arith.subf %8, %24 : vector<4x128xf32>
      %26 = vector.broadcast %23 : vector<1x128xf32> to vector<4x128xf32>
      %27 = arith.mulf %25, %26 : vector<4x128xf32>
      %c0_12 = arith.constant 0 : index
      %c0_13 = arith.constant 0 : index
      %28 = vector.load %arg5[%c0_12, %c0_13] : memref<1x128xf32, #tpu.memory_space<vmem>>, vector<1x128xf32>
      %29 = vector.broadcast %28 : vector<1x128xf32> to vector<4x128xf32>
      %30 = arith.addf %27, %29 : vector<4x128xf32>
      %31 = arith.negf %30 : vector<4x128xf32>
      %32 = math.exp %31 : vector<4x128xf32>
      %cst_14 = arith.constant 1.000000e+00 : f32
      %33 = vector.broadcast %cst_14 : f32 to vector<4x128xf32>
      %34 = arith.addf %33, %32 : vector<4x128xf32>
      %35 = arith.divf %33, %34 : vector<4x128xf32>
      %36 = arith.truncf %35 : vector<4x128xf32> to vector<4x128xbf16>
      %c0_15 = arith.constant 0 : index
      %c0_16 = arith.constant 0 : index
      %37 = vector.load %arg6[%c0_15, %c0_16] : memref<4x128xbf16, #tpu.memory_space<vmem>>, vector<4x128xbf16>
      tpu.vector_store %arg6[%c0_15, %c0_16], %36 {strides = array<i32>} : memref<4x128xbf16, #tpu.memory_space<vmem>>, vector<4x128xbf16>,
    } else {
    }
    return
  }
  func.func @transform_0(%arg0: i32, %arg1: i32) -> (i32, i32) {
    %c1_i32 = arith.constant 1 : i32
    %0 = arith.subi %c1_i32, %arg0 : i32
    %1 = arith.muli %0, %arg1 : i32
    %c0_i32 = arith.constant 0 : i32
    %c0_i32_0 = arith.constant 0 : i32
    return %1, %c0_i32 : i32, i32
  }
  func.func @transform_1(%arg0: i32, %arg1: i32) -> (i32, i32) {
    %c0_i32 = arith.constant 0 : i32
    %c0_i32_0 = arith.constant 0 : i32
    %c0_i32_1 = arith.constant 0 : i32
    return %c0_i32, %c0_i32_0 : i32, i32
  }
  func.func @transform_2(%arg0: i32, %arg1: i32) -> (i32, i32) {
    %c0_i32 = arith.constant 0 : i32
    %c0_i32_0 = arith.constant 0 : i32
    %c0_i32_1 = arith.constant 0 : i32
    return %c0_i32, %c0_i32_0 : i32, i32
  }
  func.func @transform_3(%arg0: i32, %arg1: i32) -> (i32, i32) {
    %c0_i32 = arith.constant 0 : i32
    %c0_i32_0 = arith.constant 0 : i32
    %c0_i32_1 = arith.constant 0 : i32
    return %c0_i32, %c0_i32_0 : i32, i32
  }
  func.func @transform_4(%arg0: i32, %arg1: i32) -> (i32, i32) {
    %0 = arith.muli %arg0, %arg1 : i32
    %c0_i32 = arith.constant 0 : i32
    %c0_i32_0 = arith.constant 0 : i32
    return %0, %c0_i32 : i32, i32
  }
}

module attributes {stable_mosaic.version = 11 : i64} {
  func.func @_linear_kernel(%arg0: i32, %arg1: memref<2x256xbf16, #tpu.memory_space<vmem>>, %arg2: memref<256x1xbf16, #tpu.memory_space<vmem>>, %arg3: memref<1x1xf32, #tpu.memory_space<vmem>>, %arg4: memref<2x1xf32, #tpu.memory_space<vmem>>) attributes {dimension_semantics = [#tpu.dimension_semantics<parallel>], iteration_bounds = array<i64: 1>, scalar_prefetch = 0 : i64, scratch_operands = 0 : i64, tpu.core_type = #tpu.core_type<tc>, window_params = [{transform_indices = @transform_0, window_bounds = array<i64: 2, 256>}, {pipeline_mode = #tpu.pipeline_mode<synchronous>, transform_indices = @transform_1, window_bounds = array<i64: 256, 1>}, {pipeline_mode = #tpu.pipeline_mode<synchronous>, transform_indices = @transform_2, window_bounds = array<i64: 1, 1>}, {transform_indices = @transform_3, window_bounds = array<i64: 2, 1>}]} {
    %c0 = arith.constant 0 : index
    %c0_0 = arith.constant 0 : index
    %0 = vector.load %arg1[%c0, %c0_0] : memref<2x256xbf16, #tpu.memory_space<vmem>>, vector<2x256xbf16>
    %c0_1 = arith.constant 0 : index
    %c0_2 = arith.constant 0 : index
    %1 = vector.load %arg2[%c0_1, %c0_2] : memref<256x1xbf16, #tpu.memory_space<vmem>>, vector<256x1xbf16>
    %cst = arith.constant dense<0.000000e+00> : vector<2x1xf32>
    %2 = tpu.matmul %0, %1, %cst {dimension_numbers = #tpu.dot_dimension_numbers<[1], [0], [0], [1], [0, 0, 1, 1], [], []>} : vector<2x256xbf16>, vector<256x1xbf16>, vector<2x1xf32> -> vector<2x1xf32>
    %c0_3 = arith.constant 0 : index
    %c0_4 = arith.constant 0 : index
    %3 = vector.load %arg3[%c0_3, %c0_4] : memref<1x1xf32, #tpu.memory_space<vmem>>, vector<1x1xf32>
    %4 = vector.broadcast %3 : vector<1x1xf32> to vector<2x1xf32>
    %5 = arith.addf %2, %4 : vector<2x1xf32>
    %6 = arith.negf %5 : vector<2x1xf32>
    %7 = math.exp %6 : vector<2x1xf32>
    %cst_5 = arith.constant 1.000000e+00 : f32
    %8 = vector.broadcast %cst_5 : f32 to vector<2x1xf32>
    %9 = arith.addf %8, %7 : vector<2x1xf32>
    %10 = arith.divf %8, %9 : vector<2x1xf32>
    %c0_6 = arith.constant 0 : index
    %c0_7 = arith.constant 0 : index
    %11 = vector.load %arg4[%c0_6, %c0_7] : memref<2x1xf32, #tpu.memory_space<vmem>>, vector<2x1xf32>
    tpu.vector_store %arg4[%c0_6, %c0_7], %10 {strides = array<i32>} : memref<2x1xf32, #tpu.memory_space<vmem>>, vector<2x1xf32>,
    return
  }
  func.func @transform_0(%arg0: i32) -> (i32, i32) {
    %c0_i32 = arith.constant 0 : i32
    %c0_i32_0 = arith.constant 0 : i32
    return %arg0, %c0_i32 : i32, i32
  }
  func.func @transform_1(%arg0: i32) -> (i32, i32) {
    %c0_i32 = arith.constant 0 : i32
    %c0_i32_0 = arith.constant 0 : i32
    %c0_i32_1 = arith.constant 0 : i32
    return %c0_i32, %c0_i32_0 : i32, i32
  }
  func.func @transform_2(%arg0: i32) -> (i32, i32) {
    %c0_i32 = arith.constant 0 : i32
    %c0_i32_0 = arith.constant 0 : i32
    %c0_i32_1 = arith.constant 0 : i32
    return %c0_i32, %c0_i32_0 : i32, i32
  }
  func.func @transform_3(%arg0: i32) -> (i32, i32) {
    %c0_i32 = arith.constant 0 : i32
    %c0_i32_0 = arith.constant 0 : i32
    return %arg0, %c0_i32 : i32, i32
  }
}

</mosaic_0001>

<bundles_post_ra>
// kernel: adv_net_forward.5
= control target key start
LH: loop header
LB: loop body
LE: loop exit
PB: predicated region body
PF: predicated region fallthrough
CT: control target
= control target key end

     0   :  { %s1504_s15 = smov 0   ;;  %s1506_s16 = smov 0   ;;  %s2218_s0 = inlined_call_operand.vmem [shape: bf16[256,36], index: 0, kind: input, shape index: {}]   ;;  %s2219_s1 = inlined_call_operand.vmem [shape: bf16[36,16], index: 1, kind: input, shape index: {}]   ;;  %s2220_s2 = inlined_call_operand.vmem [shape: f32[1,16], index: 2, kind: input, shape index: {}]   ;;  %s2221_s3 = inlined_call_operand.vmem [shape: f32[1,16], index: 3, kind: input, shape index: {}]   ;;  %s2222_s4 = inlined_call_operand.vmem [shape: bf16[256,16], index: 4, kind: output, shape index: {}]  }
   0x1   :  { %s1508_s17 = smov 0  }
   0x2 LB: > { %s26_s18 = sadd.s32 1, %s1472_s16  ;;  %p1236_p0 = scmp.ge.s32.totalorder %s1476_s17, 1  ;;  %s1476_s17 = sphi %s1508_s17, %s14_s17   ;;  %s1472_s16 = sphi %s1506_s16, %s2237_s16   ;;  %s1468_s15 = sphi %s1504_s15, %s2236_s15  }
   0x3   : > { %p28_p1 = scmp.ge.s32.totalorder %s26_s18, 2  ;;  %p185_p2 = scmp.lt.s32.totalorder %s1476_s17, 3 }
   0x5   : > { %s2239_s18 = smov (%p28_p1, %s26_s18), 0  ;;  %p186_p3 = pnand %p1236_p0, %p185_p2 }
   0x6   : > { %p1237_p4 = scmp.ne.s32.totalorder (!%p186_p3), %s1468_s15, 0 }
   0x7   : > { %189 = sbr.rel (%p186_p3) target bundleno = 393 (0x189), region = 36 }
   0xe   : > { %236 = sbr.rel (%p1237_p4) target bundleno = 322 (0x142), region = 40  ;;  %v1433_v0 = vld [vmem:[%s2219_s1] sm:$0xff] (!%p1237_p4)   ;;  %v1434_v1 = vld [vmem:[%s2219_s1 + $0x8] sm:$0xff] (!%p1237_p4)   ;;  %vm369_vm0 = vcmask (!%p1237_p4), 293888   ;;  %vm418_vm1 = vcmask (!%p1237_p4), 1041408   ;;  %v1438_v6 = vld [vmem:[%s2218_s0 + $0x10] sm:$0xff] (!%p1237_p4)  }
   0xf   : > { %1362 = vmatprep.subr.bf16.mxu0 (!%p1237_p4), %v1433_v0  ;;  %v1435_v2 = vld [vmem:[%s2219_s1 + $0x10] ss:$0 sps:$4 sm:$0x33] (!%p1237_p4)   ;;  %v1436_v3 = vld [vmem:[%s2218_s0] sm:$0xff] (!%p1237_p4)   ;;  %1400 = vmatprep.subr.bf16.mxu1 (!%p1237_p4), %v1433_v0  ;;  %v1437_v5 = vld [vmem:[%s2218_s0 + $0x8] sm:$0xff] (!%p1237_p4)   ;;  %vm587_vm2 = vcmask (!%p1237_p4), 122880  }
  0x10   : > { %1363 = vmatpush3.bf16.msra.mxu0 (!%p1237_p4), %v1433_v0  ;;  %1403 = vmatpush3.bf16.msra.mxu1 (!%p1237_p4), %v1433_v0  ;;  %v420_v4 = vsel (!%p1237_p4), %vm418_vm1, %v1435_v2, 0  ;;  %v1444_v7 = vld [vmem:[%s2218_s0 + $0x40] sm:$0xff] (!%p1237_p4)   ;;  %v1445_v8 = vld [vmem:[%s2218_s0 + $0x48] sm:$0xff] (!%p1237_p4)   ;;  %v1446_v9 = vld [vmem:[%s2218_s0 + $0x50] sm:$0xff] (!%p1237_p4)   ;;  %v1478_v20 = vmov (!%p1237_p4), 0.0   ;;  %vm591_vm3 = vcmask (!%p1237_p4), 130048  }
  0x11   : > { %1364 = vmatprep.subr.bf16.mxu0 (!%p1237_p4), %v1434_v1  ;;  %1368 = vmatprep.mubr.msk.bf16.mxu0 (!%p1237_p4), %vm369_vm0, %v1436_v3  ;;  %v1439_v10 = vld [vmem:[%s2218_s0 + $0x18] sm:$0xff] (!%p1237_p4)   ;;  %v1440_v12 = vld [vmem:[%s2218_s0 + $0x20] sm:$0xff] (!%p1237_p4)   ;;  %v1441_v14 = vld [vmem:[%s2218_s0 + $0x28] sm:$0xff] (!%p1237_p4)   ;;  %588 = vst.msk [vmem:[#allocation2] sm:$0x1] (!%p1237_p4), %vm587_vm2, %v1478_v20 }
  0x12   : > { %1401 = vmatprep.subr.bf16.mxu1 (!%p1237_p4), %v1434_v1  ;;  %1384 = vmatprep.mubr.msk.bf16.mxu1 (!%p1237_p4), %vm369_vm0, %v1444_v7  ;;  %v1447_v11 = vld [vmem:[%s2218_s0 + $0x58] sm:$0xff] (!%p1237_p4)   ;;  %v1448_v13 = vld [vmem:[%s2218_s0 + $0x60] sm:$0xff] (!%p1237_p4)   ;;  %v1449_v15 = vld [vmem:[%s2218_s0 + $0x68] sm:$0xff] (!%p1237_p4)   ;;  %589 = vst.msk [vmem:[#allocation3] sm:$0x1] (!%p1237_p4), %vm587_vm2, %v1478_v20 }
  0x13   : > { %v1442_v16 = vld [vmem:[%s2218_s0 + $0x30] sm:$0xff] (!%p1237_p4)   ;;  %v1443_v18 = vld [vmem:[%s2218_s0 + $0x38] sm:$0xff] (!%p1237_p4)  }
  0x14   : > { %1365 = vmatpush3.bf16.msra.mxu0 (!%p1237_p4), %v1434_v1  ;;  %1404 = vmatpush3.bf16.msra.mxu1 (!%p1237_p4), %v1434_v1  ;;  %v1450_v17 = vld [vmem:[%s2218_s0 + $0x70] sm:$0xff] (!%p1237_p4)   ;;  %v1451_v19 = vld [vmem:[%s2218_s0 + $0x78] sm:$0xff] (!%p1237_p4)  }
  0x15   : > { %1406 = vmatprep.subr.msk.bf16.mxu0 %vm418_vm1, %v1435_v2  ;;  %1407 = vmatprep.subr.msk.bf16.mxu1 %vm418_vm1, %v1435_v2 }
  0x18   : > { %1367 = vmatpush3.bf16.msra.mxu0 %v420_v4  ;;  %1405 = vmatpush3.bf16.msra.mxu1 %v420_v4 }
  0x1b   : > { %1369 = vmatmul.mubr.msk.bf16.vlgmr.msra.gmra.mrb[0].mxu0 %vm369_vm0, %v1437_v5  ;;  %1385 = vmatmul.mubr.msk.bf16.vlgmr.msra.gmra.mrb[0].mxu1 %vm369_vm0, %v1445_v8 }
  0x1c   : > { %1372 = vmatprep.mubr.msk.bf16.mxu0 %vm369_vm0, %v1438_v6  ;;  %1388 = vmatprep.mubr.msk.bf16.mxu1 %vm369_vm0, %v1446_v9 }
  0x23   : > { %1373 = vmatmul.mubr.msk.bf16.gmra.mrb[4].mxu0 %vm369_vm0, %v1439_v10  ;;  %1389 = vmatmul.mubr.msk.bf16.gmra.mrb[4].mxu1 %vm369_vm0, %v1447_v11 }
  0x24   : > { %1376 = vmatprep.mubr.msk.bf16.mxu0 %vm369_vm0, %v1440_v12  ;;  %1392 = vmatprep.mubr.msk.bf16.mxu1 %vm369_vm0, %v1448_v13 }
  0x2b   : > { %1377 = vmatmul.mubr.msk.bf16.gmra.mrb[8].mxu0 %vm369_vm0, %v1441_v14  ;;  %1393 = vmatmul.mubr.msk.bf16.gmra.mrb[8].mxu1 %vm369_vm0, %v1449_v15 }
  0x2c   : > { %1380 = vmatprep.mubr.msk.bf16.mxu0 %vm369_vm0, %v1442_v16  ;;  %1396 = vmatprep.mubr.msk.bf16.mxu1 %vm369_vm0, %v1450_v17 }
  0x33   : > { %1381 = vmatmul.mubr.msk.bf16.gmra.mrb[12].mxu0 %vm369_vm0, %v1443_v18  ;;  %1397 = vmatmul.mubr.msk.bf16.gmra.mrb[12].mxu1 %vm369_vm0, %v1451_v19 }
  0xee   : > { %v1370_v21 = vpop.f32.mrb[0].mxu0  ;;  %v1600_v22 = vpop.f32.mrb[0].mxu1 }
  0xef   : > { %772 = vst.msk [vmem:[#allocation4 + $0x10] sm:$0xff] %vm591_vm3, %v1370_v21  ;;  %v456_v23 = vpop.f32.mrb[1].mxu0  ;;  %788 = vst.msk [vmem:[#allocation4 + $0x90] sm:$0xff] %vm591_vm3, %v1600_v22  ;;  %v1605_v24 = vpop.f32.mrb[1].mxu1  ;;  %v667_v30 = vmul.f32 %v1370_v21, %v1370_v21  ;;  %v595_v35 = vsel %vm591_vm3, %v1370_v21, 0.0 }
  0xf0   : > { %v665_v25 = vmul.f32 %v456_v23, %v456_v23  ;;  %770 = vst.msk [vmem:[#allocation4] sm:$0xff] %vm591_vm3, %v456_v23  ;;  %v1371_v26 = vpop.f32.mrb[2].mxu0  ;;  %786 = vst.msk [vmem:[#allocation4 + $0x80] sm:$0xff] %vm591_vm3, %v1605_v24  ;;  %v1610_v27 = vpop.f32.mrb[2].mxu1  ;;  %v592_v31 = vsel %vm591_vm3, %v456_v23, 0.0 }
  0xf1   : > { %773 = vst.msk [vmem:[#allocation4 + $0x18] sm:$0xff] %vm591_vm3, %v1371_v26  ;;  %v459_v28 = vpop.f32.mrb[3].mxu0  ;;  %789 = vst.msk [vmem:[#allocation4 + $0x98] sm:$0xff] %vm591_vm3, %v1610_v27  ;;  %v1615_v29 = vpop.f32.mrb[3].mxu1  ;;  %v668_v37 = vmul.f32 %v1371_v26, %v1371_v26  ;;  %v700_v41 = vsel %vm591_vm3, %v667_v30, 0.0  ;;  %v597_v42 = vsel %vm591_vm3, %v1371_v26, 0.0 }
  0xf2   : > { %v593_v32 = vsel %vm591_vm3, %v459_v28, 0.0  ;;  %v666_v33 = vmul.f32 %v459_v28, %v459_v28  ;;  %771 = vst.msk [vmem:[#allocation4 + $0x8] sm:$0xff] %vm591_vm3, %v459_v28  ;;  %787 = vst.msk [vmem:[#allocation4 + $0x88] sm:$0xff] %vm591_vm3, %v1615_v29  ;;  %v697_v36 = vsel %vm591_vm3, %v665_v25, 0.0 }
  0xf3   : > { %v594_v34 = vadd.f32 %v593_v32, %v592_v31  ;;  %v702_v49 = vsel %vm591_vm3, %v668_v37, 0.0 }
  0xf4   : > { %v698_v38 = vsel %vm591_vm3, %v666_v33, 0.0 }
  0xf5   : > { %v596_v39 = vadd.f32 %v595_v35, %v594_v34  ;;  %v699_v40 = vadd.f32 %v698_v38, %v697_v36 }
  0xf6   : > { %v1374_v43 = vpop.f32.mrb[4].mxu0  ;;  %v1627_v44 = vpop.f32.mrb[4].mxu1 }
  0xf7   : > { %v701_v45 = vadd.f32 %v700_v41, %v699_v40  ;;  %776 = vst.msk [vmem:[#allocation4 + $0x30] sm:$0xff] %vm591_vm3, %v1374_v43  ;;  %v472_v46 = vpop.f32.mrb[5].mxu0  ;;  %v598_v47 = vadd.f32 %v597_v42, %v596_v39  ;;  %792 = vst.msk [vmem:[#allocation4 + $0xb0] sm:$0xff] %vm591_vm3, %v1627_v44  ;;  %v1632_v48 = vpop.f32.mrb[5].mxu1  ;;  %v671_v58 = vmul.f32 %v1374_v43, %v1374_v43  ;;  %v603_v0 = vsel %vm591_vm3, %v1374_v43, 0.0 }
  0xf8   : > { %v599_v50 = vsel %vm591_vm3, %v472_v46, 0.0  ;;  %v669_v51 = vmul.f32 %v472_v46, %v472_v46  ;;  %774 = vst.msk [vmem:[#allocation4 + $0x20] sm:$0xff] %vm591_vm3, %v472_v46  ;;  %v1375_v52 = vpop.f32.mrb[6].mxu0  ;;  %790 = vst.msk [vmem:[#allocation4 + $0xa0] sm:$0xff] %vm591_vm3, %v1632_v48  ;;  %v1639_v53 = vpop.f32.mrb[6].mxu1 }
  0xf9   : > { %v600_v54 = vadd.f32 %v599_v50, %v598_v47  ;;  %v703_v55 = vadd.f32 %v702_v49, %v701_v45  ;;  %777 = vst.msk [vmem:[#allocation4 + $0x38] sm:$0xff] %vm591_vm3, %v1375_v52  ;;  %v475_v56 = vpop.f32.mrb[7].mxu0  ;;  %793 = vst.msk [vmem:[#allocation4 + $0xb8] sm:$0xff] %vm591_vm3, %v1639_v53  ;;  %v1644_v57 = vpop.f32.mrb[7].mxu1  ;;  %v672_v1 = vmul.f32 %v1375_v52, %v1375_v52  ;;  %v708_v5 = vsel %vm591_vm3, %v671_v58, 0.0 }
  0xfa   : > { %v704_v59 = vsel %vm591_vm3, %v669_v51, 0.0  ;;  %v601_v60 = vsel %vm591_vm3, %v475_v56, 0.0  ;;  %v670_v61 = vmul.f32 %v475_v56, %v475_v56  ;;  %775 = vst.msk [vmem:[#allocation4 + $0x28] sm:$0xff] %vm591_vm3, %v475_v56  ;;  %791 = vst.msk [vmem:[#allocation4 + $0xa8] sm:$0xff] %vm591_vm3, %v1644_v57  ;;  %v605_v6 = vsel %vm591_vm3, %v1375_v52, 0.0 }
  0xfb   : > { %v705_v62 = vadd.f32 %v704_v59, %v703_v55  ;;  %v602_v63 = vadd.f32 %v601_v60, %v600_v54  ;;  %v710_v13 = vsel %vm591_vm3, %v672_v1, 0.0 }
  0xfc   : > { %v706_v2 = vsel %vm591_vm3, %v670_v61, 0.0 }
  0xfd   : > { %v604_v3 = vadd.f32 %v603_v0, %v602_v63  ;;  %v707_v4 = vadd.f32 %v706_v2, %v705_v62 }
  0xfe   : > { %v1378_v7 = vpop.f32.mrb[8].mxu0  ;;  %v1655_v8 = vpop.f32.mrb[8].mxu1 }
  0xff   : > { %v709_v9 = vadd.f32 %v708_v5, %v707_v4  ;;  %780 = vst.msk [vmem:[#allocation4 + $0x50] sm:$0xff] %vm591_vm3, %v1378_v7  ;;  %v488_v10 = vpop.f32.mrb[9].mxu0  ;;  %v606_v11 = vadd.f32 %v605_v6, %v604_v3  ;;  %796 = vst.msk [vmem:[#allocation4 + $0xd0] sm:$0xff] %vm591_vm3, %v1655_v8  ;;  %v1660_v12 = vpop.f32.mrb[9].mxu1  ;;  %v675_v23 = vmul.f32 %v1378_v7, %v1378_v7  ;;  %v611_v32 = vsel %vm591_vm3, %v1378_v7, 0.0 }
 0x100   : > { %v607_v14 = vsel %vm591_vm3, %v488_v10, 0.0  ;;  %v673_v15 = vmul.f32 %v488_v10, %v488_v10  ;;  %778 = vst.msk [vmem:[#allocation4 + $0x40] sm:$0xff] %vm591_vm3, %v488_v10  ;;  %v1379_v16 = vpop.f32.mrb[10].mxu0  ;;  %794 = vst.msk [vmem:[#allocation4 + $0xc0] sm:$0xff] %vm591_vm3, %v1660_v12  ;;  %v1667_v17 = vpop.f32.mrb[10].mxu1  ;;  %v681_v3 = vmul.f32 %v1605_v24, %v1605_v24 }
 0x101   : > { %v608_v18 = vadd.f32 %v607_v14, %v606_v11  ;;  %v711_v19 = vadd.f32 %v710_v13, %v709_v9  ;;  %781 = vst.msk [vmem:[#allocation4 + $0x58] sm:$0xff] %vm591_vm3, %v1379_v16  ;;  %v491_v20 = vpop.f32.mrb[11].mxu0  ;;  %797 = vst.msk [vmem:[#allocation4 + $0xd8] sm:$0xff] %vm591_vm3, %v1667_v17  ;;  %v1672_v21 = vpop.f32.mrb[11].mxu1  ;;  %v676_v33 = vmul.f32 %v1379_v16, %v1379_v16  ;;  %v716_v37 = vsel %vm591_vm3, %v675_v23, 0.0 }
 0x102   : > { %v712_v25 = vsel %vm591_vm3, %v673_v15, 0.0  ;;  %v609_v26 = vsel %vm591_vm3, %v491_v20, 0.0  ;;  %v674_v28 = vmul.f32 %v491_v20, %v491_v20  ;;  %779 = vst.msk [vmem:[#allocation4 + $0x48] sm:$0xff] %vm591_vm3, %v491_v20  ;;  %795 = vst.msk [vmem:[#allocation4 + $0xc8] sm:$0xff] %vm591_vm3, %v1672_v21  ;;  %v613_v38 = vsel %vm591_vm3, %v1379_v16, 0.0 }
 0x103   : > { %v713_v30 = vadd.f32 %v712_v25, %v711_v19  ;;  %v610_v31 = vadd.f32 %v609_v26, %v608_v18  ;;  %v718_v46 = vsel %vm591_vm3, %v676_v33, 0.0  ;;  %v623_v9 = vsel %vm591_vm3, %v1605_v24, 0.0 }
 0x104   : > { %v714_v34 = vsel %vm591_vm3, %v674_v28, 0.0  ;;  %v728_v15 = vsel %vm591_vm3, %v681_v3, 0.0  ;;  %v682_v16 = vmul.f32 %v1615_v29, %v1615_v29  ;;  %v683_v24 = vmul.f32 %v1600_v22, %v1600_v22 }
 0x105   : > { %v612_v35 = vadd.f32 %v611_v32, %v610_v31  ;;  %v715_v36 = vadd.f32 %v714_v34, %v713_v30  ;;  %v625_v23 = vsel %vm591_vm3, %v1615_v29, 0.0  ;;  %v627_v28 = vsel %vm591_vm3, %v1600_v22, 0.0 }
 0x106   : > { %v1382_v39 = vpop.f32.mrb[12].mxu0  ;;  %v1683_v40 = vpop.f32.mrb[12].mxu1  ;;  %v684_v30 = vmul.f32 %v1610_v27, %v1610_v27  ;;  %v730_v31 = vsel %vm591_vm3, %v682_v16, 0.0  ;;  %v685_v32 = vmul.f32 %v1632_v48, %v1632_v48  ;;  %v629_v29 = vsel %vm591_vm3, %v1610_v27, 0.0 }
 0x107   : > { %v717_v41 = vadd.f32 %v716_v37, %v715_v36  ;;  %784 = vst.msk [vmem:[#allocation4 + $0x70] sm:$0xff] %vm591_vm3, %v1382_v39  ;;  %v504_v42 = vpop.f32.mrb[13].mxu0  ;;  %v614_v43 = vadd.f32 %v613_v38, %v612_v35  ;;  %800 = vst.msk [vmem:[#allocation4 + $0xf0] sm:$0xff] %vm591_vm3, %v1683_v40  ;;  %v1688_v45 = vpop.f32.mrb[13].mxu1  ;;  %v679_v58 = vmul.f32 %v1382_v39, %v1382_v39  ;;  %v619_v0 = vsel %vm591_vm3, %v1382_v39, 0.0 }
 0x108   : > { %v615_v47 = vsel %vm591_vm3, %v504_v42, 0.0  ;;  %v677_v49 = vmul.f32 %v504_v42, %v504_v42  ;;  %782 = vst.msk [vmem:[#allocation4 + $0x60] sm:$0xff] %vm591_vm3, %v504_v42  ;;  %v1383_v50 = vpop.f32.mrb[14].mxu0  ;;  %798 = vst.msk [vmem:[#allocation4 + $0xe0] sm:$0xff] %vm591_vm3, %v1688_v45  ;;  %v1695_v51 = vpop.f32.mrb[14].mxu1  ;;  %v732_v35 = vsel %vm591_vm3, %v683_v24, 0.0  ;;  %v691_v3 = vmul.f32 %v1655_v8, %v1655_v8 }
 0x109   : > { %v616_v52 = vadd.f32 %v615_v47, %v614_v43  ;;  %v719_v54 = vadd.f32 %v718_v46, %v717_v41  ;;  %785 = vst.msk [vmem:[#allocation4 + $0x78] sm:$0xff] %vm591_vm3, %v1383_v50  ;;  %v507_v55 = vpop.f32.mrb[15].mxu0  ;;  %801 = vst.msk [vmem:[#allocation4 + $0xf8] sm:$0xff] %vm591_vm3, %v1695_v51  ;;  %v1700_v56 = vpop.f32.mrb[15].mxu1  ;;  %v680_v1 = vmul.f32 %v1383_v50, %v1383_v50  ;;  %v724_v6 = vsel %vm591_vm3, %v679_v58, 0.0 }
 0x10a   : > { %v720_v59 = vsel %vm591_vm3, %v677_v49, 0.0  ;;  %v617_v60 = vsel %vm591_vm3, %v507_v55, 0.0  ;;  %v678_v61 = vmul.f32 %v507_v55, %v507_v55  ;;  %783 = vst.msk [vmem:[#allocation4 + $0x68] sm:$0xff] %vm591_vm3, %v507_v55  ;;  %799 = vst.msk [vmem:[#allocation4 + $0xe8] sm:$0xff] %vm591_vm3, %v1700_v56  ;;  %v621_v7 = vsel %vm591_vm3, %v1383_v50, 0.0 }
 0x10b   : > { %v721_v62 = vadd.f32 %v720_v59, %v719_v54  ;;  %v618_v63 = vadd.f32 %v617_v60, %v616_v52  ;;  %v696_v10 = vmul.f32 %v1695_v51, %v1695_v51  ;;  %v726_v14 = vsel %vm591_vm3, %v680_v1, 0.0 }
 0x10c   : > { %v722_v2 = vsel %vm591_vm3, %v678_v61, 0.0  ;;  %v631_v36 = vsel %vm591_vm3, %v1632_v48, 0.0  ;;  %v734_v38 = vsel %vm591_vm3, %v684_v30, 0.0  ;;  %v736_v39 = vsel %vm591_vm3, %v685_v32, 0.0 }
 0x10d   : > { %v620_v4 = vadd.f32 %v619_v0, %v618_v63  ;;  %v723_v5 = vadd.f32 %v722_v2, %v721_v62  ;;  %v1722_v18 = vsel %vm591_vm3, %v696_v10, 0.0  ;;  %v686_v41 = vmul.f32 %v1644_v57, %v1644_v57 }
 0x10e   : > { %v687_v46 = vmul.f32 %v1627_v44, %v1627_v44  ;;  %v633_v27 = vsel %vm591_vm3, %v1644_v57, 0.0  ;;  %v635_v48 = vsel %vm591_vm3, %v1627_v44, 0.0  ;;  %v688_v50 = vmul.f32 %v1639_v53, %v1639_v53 }
 0x10f   : > { %v725_v11 = vadd.f32 %v724_v6, %v723_v5  ;;  %v622_v13 = vadd.f32 %v621_v7, %v620_v4  ;;  %v738_v52 = vsel %vm591_vm3, %v686_v41, 0.0  ;;  %v689_v54 = vmul.f32 %v1660_v12, %v1660_v12 }
 0x110   : > { %v740_v59 = vsel %vm591_vm3, %v687_v46, 0.0  ;;  %v637_v57 = vsel %vm591_vm3, %v1639_v53, 0.0  ;;  %v639_v60 = vsel %vm591_vm3, %v1660_v12, 0.0  ;;  %v742_v62 = vsel %vm591_vm3, %v688_v50, 0.0  ;;  %v590_v46 = vld [vmem:[#allocation2] sm:$0x1] }
 0x111   : > { %v624_v19 = vadd.f32 %v623_v9, %v622_v13  ;;  %v727_v20 = vadd.f32 %v726_v14, %v725_v11  ;;  %v744_v63 = vsel %vm591_vm3, %v689_v54, 0.0  ;;  %v690_v0 = vmul.f32 %v1672_v21, %v1672_v21 }
 0x112   : > { %v641_v53 = vsel %vm591_vm3, %v1672_v21, 0.0  ;;  %v643_v12 = vsel %vm591_vm3, %v1655_v8, 0.0  ;;  %v692_v6 = vmul.f32 %v1667_v17, %v1667_v17  ;;  %v693_v9 = vmul.f32 %v1688_v45, %v1688_v45 }
 0x113   : > { %v729_v25 = vadd.f32 %v728_v15, %v727_v20  ;;  %v626_v26 = vadd.f32 %v625_v23, %v624_v19  ;;  %v746_v7 = vsel %vm591_vm3, %v690_v0, 0.0  ;;  %v748_v13 = vsel %vm591_vm3, %v691_v3, 0.0 }
 0x114   : > { %v645_v21 = vsel %vm591_vm3, %v1667_v17, 0.0  ;;  %v647_v14 = vsel %vm591_vm3, %v1688_v45, 0.0  ;;  %v750_v16 = vsel %vm591_vm3, %v692_v6, 0.0  ;;  %v752_v19 = vsel %vm591_vm3, %v693_v9, 0.0 }
 0x115   : > { %v628_v33 = vadd.f32 %v627_v28, %v626_v26  ;;  %v731_v34 = vadd.f32 %v730_v31, %v729_v25  ;;  %v694_v20 = vmul.f32 %v1700_v56, %v1700_v56  ;;  %v695_v25 = vmul.f32 %v1683_v40, %v1683_v40 }
 0x116   : > { %v649_v17 = vsel %vm591_vm3, %v1700_v56, 0.0  ;;  %v651_v45 = vsel %vm591_vm3, %v1683_v40, 0.0 }
 0x117   : > { %v733_v37 = vadd.f32 %v732_v35, %v731_v34  ;;  %v630_v22 = vadd.f32 %v629_v29, %v628_v33  ;;  %v754_v30 = vsel %vm591_vm3, %v694_v20, 0.0  ;;  %v756_v33 = vsel %vm591_vm3, %v695_v25, 0.0 }
 0x118   : > { %v653_v34 = vsel %vm591_vm3, %v1695_v51, 0.0 }
 0x119   : > { %v632_v42 = vadd.f32 %v631_v36, %v630_v22  ;;  %v735_v43 = vadd.f32 %v734_v38, %v733_v37 }
 0x11b   : > { %v737_v47 = vadd.f32 %v736_v39, %v735_v43  ;;  %v634_v49 = vadd.f32 %v633_v27, %v632_v42 }
 0x11d   : > { %v636_v55 = vadd.f32 %v635_v48, %v634_v49  ;;  %v739_v58 = vadd.f32 %v738_v52, %v737_v47  ;;  %v664_v49 = vld [vmem:[#allocation3] sm:$0x1] }
 0x11f   : > { %v741_v61 = vadd.f32 %v740_v59, %v739_v58  ;;  %v638_v44 = vadd.f32 %v637_v57, %v636_v55 }
 0x121   : > { %v640_v1 = vadd.f32 %v639_v60, %v638_v44  ;;  %v743_v2 = vadd.f32 %v742_v62, %v741_v61 }
 0x123   : > { %v745_v4 = vadd.f32 %v744_v63, %v743_v2  ;;  %v642_v5 = vadd.f32 %v641_v53, %v640_v1 }
 0x125   : > { %v644_v10 = vadd.f32 %v643_v12, %v642_v5  ;;  %v747_v11 = vadd.f32 %v746_v7, %v745_v4 }
 0x127   : > { %v749_v15 = vadd.f32 %v748_v13, %v747_v11  ;;  %v646_v8 = vadd.f32 %v645_v21, %v644_v10 }
 0x129   : > { %v648_v24 = vadd.f32 %v647_v14, %v646_v8  ;;  %v751_v23 = vadd.f32 %v750_v16, %v749_v15 }
 0x12b   : > { %v753_v26 = vadd.f32 %v752_v19, %v751_v23  ;;  %v650_v28 = vadd.f32 %v649_v17, %v648_v24 }
 0x12d   : > { %v652_v31 = vadd.f32 %v651_v45, %v650_v28  ;;  %v755_v32 = vadd.f32 %v754_v30, %v753_v26 }
 0x12f   : > { %v654_v35 = vadd.f32 %v653_v34, %v652_v31  ;;  %v757_v29 = vadd.f32 %v756_v33, %v755_v32 }
 0x131   : > { %v655_v36 = vrot.slane %v654_v35, 4  ;;  %v759_v37 = vadd.f32 %v1722_v18, %v757_v29 }
 0x133   : > { %v656_v56 = vadd.f32 %v655_v36, %v654_v35  ;;  %v760_v22 = vrot.slane %v759_v37, 4 }
 0x135   : > { %v657_v38 = vrot.slane %v656_v56, 2  ;;  %v761_v39 = vadd.f32 %v760_v22, %v759_v37 }
 0x137   : > { %v658_v41 = vadd.f32 %v657_v38, %v656_v56  ;;  %v762_v40 = vrot.slane %v761_v39, 2 }
 0x139   : > { %v659_v42 = vrot.slane %v658_v41, 1  ;;  %v763_v43 = vadd.f32 %v762_v40, %v761_v39 }
 0x13b   : > { %v660_v27 = vadd.f32 %v659_v42, %v658_v41  ;;  %v764_v47 = vrot.slane %v763_v43, 1 }
 0x13d   : > { %v661_v48 = vadd.f32 %v660_v27, %v590_v46  ;;  %v765_v50 = vadd.f32 %v764_v47, %v763_v43 }
 0x13f   : > { %663 = vst.msk [vmem:[#allocation2] sm:$0x1] %vm587_vm2, %v661_v48  ;;  %v766_v51 = vadd.f32 %v765_v50, %v664_v49 }
 0x141   : > { %767 = vst.msk [vmem:[#allocation3] sm:$0x1] %vm587_vm2, %v766_v51 }
 0x142 PF: > { %p1273_p5 = scmp.ne.s32.totalorder %s1468_s15, 1 }
 0x143   : > { %v852_v58 = vlaneseq (!%p1273_p5)  ;;  %v1801_v63 = vld [vmem:[#allocation4] sm:$0xff] (!%p1273_p5)  ;;  %v1803_v0 = vld [vmem:[#allocation4 + $0x8] sm:$0xff] (!%p1273_p5)  ;;  %v1809_v2 = vld [vmem:[#allocation4 + $0x10] sm:$0xff] (!%p1273_p5)  ;;  %vm1126_vm4 = vcmask (!%p1273_p5), 125952  }
 0x144   : > { %805 = sbr.rel (%p1273_p5) target bundleno = 393 (0x189), region = 48  ;;  %v1811_v3 = vld [vmem:[#allocation4 + $0x18] sm:$0xff] (!%p1273_p5)  ;;  %v1813_v53 = vld [vmem:[#allocation4 + $0x20] sm:$0xff] (!%p1273_p5)  ;;  %v1815_v4 = vld [vmem:[#allocation4 + $0x28] sm:$0xff] (!%p1273_p5) }
 0x145   : > { %v1798_v60 = vshrl.u32 (!%p1273_p5), %v852_v58, 7  ;;  %v1817_v5 = vld [vmem:[#allocation4 + $0x30] sm:$0xff] (!%p1273_p5)  ;;  %v1819_v12 = vld [vmem:[#allocation4 + $0x38] sm:$0xff] (!%p1273_p5)  ;;  %v1821_v6 = vld [vmem:[#allocation4 + $0x40] sm:$0xff] (!%p1273_p5) }
 0x146   : > { %v840_v18 = vld [vmem:[#allocation2] sm:$0x1] (!%p1273_p5)  ;;  %v1823_v7 = vld [vmem:[#allocation4 + $0x48] sm:$0xff] (!%p1273_p5)  ;;  %v1825_v9 = vld [vmem:[#allocation4 + $0x50] sm:$0xff] (!%p1273_p5) }
 0x147   : > { %v841_v54 = vmul.f32 (!%p1273_p5), 0.00390625, %v840_v18  ;;  %v854_v62 = vsub.s32 (!%p1273_p5), 0, %v1798_v60  ;;  %v1827_v10 = vld [vmem:[#allocation4 + $0x58] sm:$0xff] (!%p1273_p5)  ;;  %v1829_v11 = vld [vmem:[#allocation4 + $0x60] sm:$0xff] (!%p1273_p5)  ;;  %v1831_v13 = vld [vmem:[#allocation4 + $0x68] sm:$0xff] (!%p1273_p5) }
 0x148   : > { %v842_v52 = vld [vmem:[#allocation3] sm:$0x1] (!%p1273_p5)  ;;  %v847_v21 = vld [vmem:[%s2220_s2] sm:$0x1] (!%p1273_p5)  ;;  %v1840_v8 = vld [vmem:[#allocation4 + $0x70] sm:$0xff] (!%p1273_p5) }
 0x149   : > { %v843_v55 = vmul.f32 (!%p1273_p5), 0.00390625, %v842_v52  ;;  %v844_v59 = vmul.f32 (!%p1273_p5), %v841_v54, %v841_v54  ;;  %v1807_v1 = vrot.slane (!%p1273_p5), %v841_v54, %v854_v62  ;;  %v1842_v16 = vld [vmem:[#allocation4 + $0x78] sm:$0xff] (!%p1273_p5)  ;;  %v1844_v19 = vld [vmem:[#allocation4 + $0x80] sm:$0xff] (!%p1273_p5)  ;;  %v1854_v17 = vld [vmem:[#allocation4 + $0x88] sm:$0xff] (!%p1273_p5) }
 0x14a   : > { %v1856_v26 = vld [vmem:[#allocation4 + $0x90] sm:$0xff] (!%p1273_p5)  ;;  %v1858_v28 = vld [vmem:[#allocation4 + $0x98] sm:$0xff] (!%p1273_p5)  ;;  %v1868_v33 = vld [vmem:[#allocation4 + $0xa0] sm:$0xff] (!%p1273_p5) }
 0x14b   : > { %v845_v57 = vsub.f32 %v843_v55, %v844_v59  ;;  %v857_v14 = vsub.f32 %v1801_v63, %v1807_v1  ;;  %v858_v15 = vsub.f32 %v1803_v0, %v1807_v1  ;;  %v859_v20 = vsub.f32 %v1809_v2, %v1807_v1  ;;  %v1870_v34 = vld [vmem:[#allocation4 + $0xa8] sm:$0xff]  ;;  %v1872_v35 = vld [vmem:[#allocation4 + $0xb0] sm:$0xff]  ;;  %v1882_v22 = vld [vmem:[#allocation4 + $0xb8] sm:$0xff] }
 0x14c   : > { %v860_v24 = vsub.f32 %v1811_v3, %v1807_v1  ;;  %v861_v23 = vsub.f32 %v1813_v53, %v1807_v1  ;;  %v862_v25 = vsub.f32 %v1815_v4, %v1807_v1  ;;  %v863_v45 = vsub.f32 %v1817_v5, %v1807_v1  ;;  %v1884_v38 = vld [vmem:[#allocation4 + $0xc0] sm:$0xff]  ;;  %v1886_v39 = vld [vmem:[#allocation4 + $0xc8] sm:$0xff]  ;;  %v1896_v27 = vld [vmem:[#allocation4 + $0xd0] sm:$0xff] }
 0x14d   : > { %v846_v61 = vmax.f32 %v845_v57, 0.0  ;;  %v864_v30 = vsub.f32 %v1819_v12, %v1807_v1  ;;  %v865_v31 = vsub.f32 %v1821_v6, %v1807_v1  ;;  %v866_v32 = vsub.f32 %v1823_v7, %v1807_v1  ;;  %v1898_v47 = vld [vmem:[#allocation4 + $0xd8] sm:$0xff]  ;;  %v1900_v49 = vld [vmem:[#allocation4 + $0xe0] sm:$0xff]  ;;  %v1908_v52 = vld [vmem:[#allocation4 + $0xe8] sm:$0xff] }
 0x14e   : > { %v867_v29 = vsub.f32 %v1825_v9, %v1807_v1  ;;  %v868_v36 = vsub.f32 %v1827_v10, %v1807_v1  ;;  %v869_v37 = vsub.f32 %v1829_v11, %v1807_v1  ;;  %v870_v56 = vsub.f32 %v1831_v13, %v1807_v1  ;;  %v1910_v54 = vld [vmem:[#allocation4 + $0xf0] sm:$0xff]  ;;  %v1912_v55 = vld [vmem:[#allocation4 + $0xf8] sm:$0xff] }
 0x14f   : > { %v848_v44 = vadd.f32 1e-05, %v846_v61  ;;  %v871_v40 = vsub.f32 %v1840_v8, %v1807_v1  ;;  %v872_v42 = vsub.f32 %v1842_v16, %v1807_v1  ;;  %v873_v43 = vsub.f32 %v1844_v19, %v1807_v1  ;;  %v1935_v3 = vld [vmem:[%s2221_s3] ss:$0 sm:$0xff] }
 0x150   : > { %v874_v46 = vsub.f32 %v1854_v17, %v1807_v1  ;;  %v875_v50 = vsub.f32 %v1856_v26, %v1807_v1  ;;  %v2224_v19 = vsub.f32 %v1868_v33, %v1807_v1  ;;  %v2225_v26 = vsub.f32 %v1870_v34, %v1807_v1 }
 0x151   : > { %1452 = vrsqrt.f32 %v848_v44 }
 0x15b   : > { %v1453_v41 = vpop.eup %1452 }
 0x15c   : > { %v850_v48 = vmul.f32 %v1453_v41, %v847_v21 }
 0x15e   : > { %v1924_v44 = vrot.slane %v850_v48, %v854_v62 }
 0x160   : > { %v895_v5 = vmul.f32 %v1924_v44, %v857_v14  ;;  %v896_v12 = vmul.f32 %v1924_v44, %v858_v15  ;;  %v897_v21 = vmul.f32 %v1924_v44, %v859_v20  ;;  %v898_v41 = vmul.f32 %v1924_v44, %v860_v24 }
 0x161   : > { %v899_v48 = vmul.f32 %v1924_v44, %v861_v23  ;;  %v900_v53 = vmul.f32 %v1924_v44, %v862_v25  ;;  %v901_v60 = vmul.f32 %v1924_v44, %v863_v45  ;;  %v902_v2 = vmul.f32 %v1924_v44, %v864_v30 }
 0x162   : > { %v934_v62 = vadd.f32 %v1935_v3, %v895_v5  ;;  %v935_v4 = vadd.f32 %v1935_v3, %v896_v12  ;;  %v936_v14 = vadd.f32 %v1935_v3, %v897_v21  ;;  %v937_v15 = vadd.f32 %v1935_v3, %v898_v41 }
 0x163   : > { %v938_v20 = vadd.f32 %v1935_v3, %v899_v48  ;;  %v939_v24 = vadd.f32 %v1935_v3, %v900_v53  ;;  %v940_v23 = vadd.f32 %v1935_v3, %v901_v60  ;;  %v941_v25 = vadd.f32 %v1935_v3, %v902_v2 }
 0x164   : > { %v966_v0 = vmax.f32 %v934_v62, 0.0  ;;  %v967_v45 = vmax.f32 %v935_v4, 0.0  ;;  %v968_v63 = vmax.f32 %v936_v14, 0.0  ;;  %v969_v30 = vmax.f32 %v937_v15, 0.0 }
 0x165   : > { %v970_v61 = vmax.f32 %v938_v20, 0.0  ;;  %v971_v5 = vmax.f32 %v939_v24, 0.0  ;;  %v972_v57 = vmax.f32 %v940_v23, 0.0  ;;  %v973_v12 = vmax.f32 %v941_v25, 0.0 }
 0x166   : > { %v1311_v59 = vpack.c.bf16 %v966_v0, %v966_v0  ;;  %v1312_v21 = vpack.c.bf16 %v967_v45, %v967_v45  ;;  %v1313_v58 = vpack.c.bf16 %v968_v63, %v968_v63  ;;  %v1314_v41 = vpack.c.bf16 %v969_v30, %v969_v30 }
 0x167   : > { %v1315_v18 = vpack.c.bf16 %v970_v61, %v970_v61  ;;  %v1316_v48 = vpack.c.bf16 %v971_v5, %v971_v5  ;;  %v1317_v51 = vpack.c.bf16 %v972_v57, %v972_v57  ;;  %v1318_v53 = vpack.c.bf16 %v973_v12, %v973_v12 }
 0x168   : > { %1127 = vst.msk [vmem:[%s2222_s4] sm:$0xf] %vm1126_vm4, %v1311_v59  ;;  %1128 = vst.msk [vmem:[%s2222_s4 + $0x4] sm:$0xf] %vm1126_vm4, %v1312_v21  ;;  %v903_v59 = vmul.f32 %v1924_v44, %v865_v31  ;;  %v904_v57 = vmul.f32 %v1924_v44, %v866_v32  ;;  %v906_v61 = vmul.f32 %v1924_v44, %v868_v36 }
 0x169   : > { %1129 = vst.msk [vmem:[%s2222_s4 + $0x8] sm:$0xf] %vm1126_vm4, %v1313_v58  ;;  %1130 = vst.msk [vmem:[%s2222_s4 + $0xc] sm:$0xf] %vm1126_vm4, %v1314_v41  ;;  %v905_v58 = vmul.f32 %v1924_v44, %v867_v29  ;;  %v907_v6 = vmul.f32 %v1924_v44, %v869_v37  ;;  %v908_v7 = vmul.f32 %v1924_v44, %v870_v56 }
 0x16a   : > { %1131 = vst.msk [vmem:[%s2222_s4 + $0x10] sm:$0xf] %vm1126_vm4, %v1315_v18  ;;  %1132 = vst.msk [vmem:[%s2222_s4 + $0x14] sm:$0xf] %vm1126_vm4, %v1316_v48  ;;  %v909_v9 = vmul.f32 %v1924_v44, %v871_v40  ;;  %v910_v10 = vmul.f32 %v1924_v44, %v872_v42  ;;  %v942_v31 = vadd.f32 %v1935_v3, %v903_v59 }
 0x16b   : > { %1133 = vst.msk [vmem:[%s2222_s4 + $0x18] sm:$0xf] %vm1126_vm4, %v1317_v51  ;;  %1134 = vst.msk [vmem:[%s2222_s4 + $0x1c] sm:$0xf] %vm1126_vm4, %v1318_v53  ;;  %v943_v11 = vadd.f32 %v1935_v3, %v904_v57  ;;  %v944_v32 = vadd.f32 %v1935_v3, %v905_v58  ;;  %v945_v13 = vadd.f32 %v1935_v3, %v906_v61 }
 0x16c   : > { %v946_v29 = vadd.f32 %v1935_v3, %v907_v6  ;;  %v947_v36 = vadd.f32 %v1935_v3, %v908_v7  ;;  %v948_v8 = vadd.f32 %v1935_v3, %v909_v9  ;;  %v949_v37 = vadd.f32 %v1935_v3, %v910_v10 }
 0x16d   : > { %v974_v56 = vmax.f32 %v942_v31, 0.0  ;;  %v975_v16 = vmax.f32 %v943_v11, 0.0  ;;  %v976_v40 = vmax.f32 %v944_v32, 0.0  ;;  %v977_v42 = vmax.f32 %v945_v13, 0.0 }
 0x16e   : > { %v978_v51 = vmax.f32 %v946_v29, 0.0  ;;  %v979_v18 = vmax.f32 %v947_v36, 0.0  ;;  %v980_v63 = vmax.f32 %v948_v8, 0.0  ;;  %v981_v0 = vmax.f32 %v949_v37, 0.0 }
 0x16f   : > { %v1319_v2 = vpack.c.bf16 %v974_v56, %v974_v56  ;;  %v1320_v60 = vpack.c.bf16 %v975_v16, %v975_v16  ;;  %v1321_v62 = vpack.c.bf16 %v976_v40, %v976_v40  ;;  %v1322_v4 = vpack.c.bf16 %v977_v42, %v977_v42 }
 0x170   : > { %v1323_v14 = vpack.c.bf16 %v978_v51, %v978_v51  ;;  %v1324_v15 = vpack.c.bf16 %v979_v18, %v979_v18  ;;  %v1325_v20 = vpack.c.bf16 %v980_v63, %v980_v63  ;;  %v1326_v24 = vpack.c.bf16 %v981_v0, %v981_v0 }
 0x171   : > { %1135 = vst.msk [vmem:[%s2222_s4 + $0x20] sm:$0xf] %vm1126_vm4, %v1319_v2  ;;  %1136 = vst.msk [vmem:[%s2222_s4 + $0x24] sm:$0xf] %vm1126_vm4, %v1320_v60  ;;  %v911_v23 = vmul.f32 %v1924_v44, %v873_v43  ;;  %v912_v25 = vmul.f32 %v1924_v44, %v874_v46  ;;  %v913_v45 = vmul.f32 %v1924_v44, %v875_v50 }
 0x172   : > { %1137 = vst.msk [vmem:[%s2222_s4 + $0x28] sm:$0xf] %vm1126_vm4, %v1321_v62  ;;  %1138 = vst.msk [vmem:[%s2222_s4 + $0x2c] sm:$0xf] %vm1126_vm4, %v1322_v4  ;;  %v2223_v30 = vsub.f32 %v1858_v28, %v1807_v1  ;;  %v915_v17 = vmul.f32 %v1924_v44, %v2224_v19  ;;  %v916_v28 = vmul.f32 %v1924_v44, %v2225_v26 }
 0x173   : > { %1139 = vst.msk [vmem:[%s2222_s4 + $0x30] sm:$0xf] %vm1126_vm4, %v1323_v14  ;;  %1140 = vst.msk [vmem:[%s2222_s4 + $0x34] sm:$0xf] %vm1126_vm4, %v1324_v15  ;;  %v2226_v43 = vsub.f32 %v1872_v35, %v1807_v1  ;;  %v2227_v50 = vsub.f32 %v1882_v22, %v1807_v1  ;;  %v950_v21 = vadd.f32 %v1935_v3, %v911_v23 }
 0x174   : > { %v914_v5 = vmul.f32 %v1924_v44, %v2223_v30  ;;  %1141 = vst.msk [vmem:[%s2222_s4 + $0x38] sm:$0xf] %vm1126_vm4, %v1325_v20  ;;  %1142 = vst.msk [vmem:[%s2222_s4 + $0x3c] sm:$0xf] %vm1126_vm4, %v1326_v24  ;;  %v951_v33 = vadd.f32 %v1935_v3, %v912_v25  ;;  %v952_v41 = vadd.f32 %v1935_v3, %v913_v45 }
 0x175   : > { %v917_v46 = vmul.f32 %v1924_v44, %v2226_v43  ;;  %v918_v12 = vmul.f32 %v1924_v44, %v2227_v50  ;;  %v954_v48 = vadd.f32 %v1935_v3, %v915_v17  ;;  %v955_v53 = vadd.f32 %v1935_v3, %v916_v28 }
 0x176   : > { %v953_v34 = vadd.f32 %v1935_v3, %v914_v5  ;;  %v982_v57 = vmax.f32 %v950_v21, 0.0  ;;  %v983_v22 = vmax.f32 %v951_v33, 0.0  ;;  %v984_v58 = vmax.f32 %v952_v41, 0.0 }
 0x177   : > { %v956_v35 = vadd.f32 %v1935_v3, %v917_v46  ;;  %v957_v59 = vadd.f32 %v1935_v3, %v918_v12  ;;  %v986_v6 = vmax.f32 %v954_v48, 0.0  ;;  %v987_v7 = vmax.f32 %v955_v53, 0.0 }
 0x178   : > { %v985_v61 = vmax.f32 %v953_v34, 0.0  ;;  %v1327_v31 = vpack.c.bf16 %v982_v57, %v982_v57  ;;  %v1328_v11 = vpack.c.bf16 %v983_v22, %v983_v22  ;;  %v1329_v32 = vpack.c.bf16 %v984_v58, %v984_v58 }
 0x179   : > { %v988_v9 = vmax.f32 %v956_v35, 0.0  ;;  %v989_v10 = vmax.f32 %v957_v59, 0.0  ;;  %v1331_v29 = vpack.c.bf16 %v986_v6, %v986_v6  ;;  %v1332_v36 = vpack.c.bf16 %v987_v7, %v987_v7 }
 0x17a   : > { %v1330_v13 = vpack.c.bf16 %v985_v61, %v985_v61  ;;  %1143 = vst.msk [vmem:[%s2222_s4 + $0x40] sm:$0xf] %vm1126_vm4, %v1327_v31  ;;  %1144 = vst.msk [vmem:[%s2222_s4 + $0x44] sm:$0xf] %vm1126_vm4, %v1328_v11  ;;  %v2228_v56 = vsub.f32 %v1884_v38, %v1807_v1  ;;  %v2229_v40 = vsub.f32 %v1886_v39, %v1807_v1 }
 0x17b   : > { %v1333_v8 = vpack.c.bf16 %v988_v9, %v988_v9  ;;  %v1334_v37 = vpack.c.bf16 %v989_v10, %v989_v10  ;;  %1145 = vst.msk [vmem:[%s2222_s4 + $0x48] sm:$0xf] %vm1126_vm4, %v1329_v32  ;;  %v2230_v51 = vsub.f32 %v1896_v27, %v1807_v1  ;;  %v2231_v63 = vsub.f32 %v1898_v47, %v1807_v1 }
 0x17c   : > { %1146 = vst.msk [vmem:[%s2222_s4 + $0x4c] sm:$0xf] %vm1126_vm4, %v1330_v13  ;;  %v919_v16 = vmul.f32 %v1924_v44, %v2228_v56  ;;  %v920_v42 = vmul.f32 %v1924_v44, %v2229_v40  ;;  %1147 = vst.msk [vmem:[%s2222_s4 + $0x50] sm:$0xf] %vm1126_vm4, %v1331_v29  ;;  %v2232_v38 = vsub.f32 %v1900_v49, %v1807_v1 }
 0x17d   : > { %v921_v18 = vmul.f32 %v1924_v44, %v2230_v51  ;;  %v922_v0 = vmul.f32 %v1924_v44, %v2231_v63  ;;  %1148 = vst.msk [vmem:[%s2222_s4 + $0x54] sm:$0xf] %vm1126_vm4, %v1332_v36  ;;  %1149 = vst.msk [vmem:[%s2222_s4 + $0x58] sm:$0xf] %vm1126_vm4, %v1333_v8  ;;  %v2233_v27 = vsub.f32 %v1908_v52, %v1807_v1 }
 0x17e   : > { %1150 = vst.msk [vmem:[%s2222_s4 + $0x5c] sm:$0xf] %vm1126_vm4, %v1334_v37  ;;  %v923_v39 = vmul.f32 %v1924_v44, %v2232_v38  ;;  %v2234_v2 = vsub.f32 %v1910_v54, %v1807_v1  ;;  %v2235_v62 = vsub.f32 %v1912_v55, %v1807_v1  ;;  %v958_v14 = vadd.f32 %v1935_v3, %v919_v16 }
 0x17f   : > { %v924_v47 = vmul.f32 %v1924_v44, %v2233_v27  ;;  %v959_v49 = vadd.f32 %v1935_v3, %v920_v42  ;;  %v960_v15 = vadd.f32 %v1935_v3, %v921_v18  ;;  %v961_v52 = vadd.f32 %v1935_v3, %v922_v0 }
 0x180   : > { %v925_v60 = vmul.f32 %v1924_v44, %v2234_v2  ;;  %v926_v4 = vmul.f32 %v1924_v44, %v2235_v62  ;;  %v962_v20 = vadd.f32 %v1935_v3, %v923_v39  ;;  %v990_v25 = vmax.f32 %v958_v14, 0.0 }
 0x181   : > { %v963_v24 = vadd.f32 %v1935_v3, %v924_v47  ;;  %v991_v1 = vmax.f32 %v959_v49, 0.0  ;;  %v992_v55 = vmax.f32 %v960_v15, 0.0  ;;  %v993_v44 = vmax.f32 %v961_v52, 0.0 }
 0x182   : > { %v964_v54 = vadd.f32 %v1935_v3, %v925_v60  ;;  %v965_v23 = vadd.f32 %v1935_v3, %v926_v4  ;;  %v994_v45 = vmax.f32 %v962_v20, 0.0  ;;  %v1335_v17 = vpack.c.bf16 %v990_v25, %v990_v25 }
 0x183   : > { %v995_v30 = vmax.f32 %v963_v24, 0.0  ;;  %v1336_v26 = vpack.c.bf16 %v991_v1, %v991_v1  ;;  %v1337_v28 = vpack.c.bf16 %v992_v55, %v992_v55  ;;  %v1338_v43 = vpack.c.bf16 %v993_v44, %v993_v44 }
 0x184   : > { %v996_v5 = vmax.f32 %v964_v54, 0.0  ;;  %v997_v19 = vmax.f32 %v965_v23, 0.0  ;;  %v1339_v46 = vpack.c.bf16 %v994_v45, %v994_v45  ;;  %1151 = vst.msk [vmem:[%s2222_s4 + $0x60] sm:$0xf] %vm1126_vm4, %v1335_v17 }
 0x185   : > { %v1340_v50 = vpack.c.bf16 %v995_v30, %v995_v30  ;;  %1152 = vst.msk [vmem:[%s2222_s4 + $0x64] sm:$0xf] %vm1126_vm4, %v1336_v26  ;;  %1153 = vst.msk [vmem:[%s2222_s4 + $0x68] sm:$0xf] %vm1126_vm4, %v1337_v28 }
 0x186   : > { %v1341_v12 = vpack.c.bf16 %v996_v5, %v996_v5  ;;  %v1342_v21 = vpack.c.bf16 %v997_v19, %v997_v19  ;;  %1154 = vst.msk [vmem:[%s2222_s4 + $0x6c] sm:$0xf] %vm1126_vm4, %v1338_v43  ;;  %1155 = vst.msk [vmem:[%s2222_s4 + $0x70] sm:$0xf] %vm1126_vm4, %v1339_v46 }
 0x187   : > { %1156 = vst.msk [vmem:[%s2222_s4 + $0x74] sm:$0xf] %vm1126_vm4, %v1340_v50 }
 0x188   : > { %1157 = vst.msk [vmem:[%s2222_s4 + $0x78] sm:$0xf] %vm1126_vm4, %v1341_v12  ;;  %1158 = vst.msk [vmem:[%s2222_s4 + $0x7c] sm:$0xf] %vm1126_vm4, %v1342_v21 }
 0x189 PF: > { %s14_s17 = sadd.s32 1, %s1476_s17   ;;  %s2236_s15 = smov %s1472_s16 }
 0x18a   : > { %p11_p6 = scmp.ge.s32.totalorder %s14_s17, 4   ;;  %s2237_s16 = smov %s2239_s18 }
 0x18c   :  { %13 = sbr.rel (!%p11_p6) target bundleno = 2 (0x2), region = 80 }

// kernel: adv_net_forward.6
= control target key start
LH: loop header
LB: loop body
LE: loop exit
PB: predicated region body
PF: predicated region fallthrough
CT: control target
= control target key end

     0   :  { %s866_s15 = smov 0   ;;  %s868_s16 = smov 0   ;;  %s1018_s0 = inlined_call_operand.vmem [shape: bf16[64,144], index: 0, kind: input, shape index: {}]   ;;  %s1019_s1 = inlined_call_operand.vmem [shape: bf16[144,32], index: 1, kind: input, shape index: {}]   ;;  %s1020_s2 = inlined_call_operand.vmem [shape: f32[1,32], index: 2, kind: input, shape index: {}]   ;;  %s1021_s3 = inlined_call_operand.vmem [shape: f32[1,32], index: 3, kind: input, shape index: {}]   ;;  %s1022_s4 = inlined_call_operand.vmem [shape: bf16[64,32], index: 4, kind: output, shape index: {}]  }
   0x1   :  { %s870_s17 = smov 0  }
   0x2 LB: > { %s26_s18 = sadd.s32 1, %s833_s16  ;;  %p703_p0 = scmp.ge.s32.totalorder %s837_s17, 1  ;;  %s837_s17 = sphi %s870_s17, %s14_s17   ;;  %s833_s16 = sphi %s868_s16, %s1024_s16   ;;  %s829_s15 = sphi %s866_s15, %s1023_s15  }
   0x3   : > { %p28_p1 = scmp.ge.s32.totalorder %s26_s18, 2  ;;  %p186_p2 = scmp.lt.s32.totalorder %s837_s17, 3 }
   0x5   : > { %s1026_s18 = smov (%p28_p1, %s26_s18), 0  ;;  %p187_p3 = pnand %p703_p0, %p186_p2 }
   0x6   : > { %p704_p4 = scmp.ne.s32.totalorder (!%p187_p3), %s829_s15, 0 }
   0x7   : > { %190 = sbr.rel (%p187_p3) target bundleno = 343 (0x157), region = 36 }
   0xe   : > { %239 = sbr.rel (%p704_p4) target bundleno = 301 (0x12d), region = 40  ;;  %v792_v0 = vld [vmem:[%s1019_s1] sm:$0xff] (!%p704_p4)   ;;  %v839_v1 = vmov (!%p704_p4), 0   ;;  %v793_v2 = vld [vmem:[%s1019_s1 + $0x8] sm:$0xff] (!%p704_p4)   ;;  %v794_v3 = vld [vmem:[%s1019_s1 + $0x10] sm:$0xff] (!%p704_p4)   ;;  %vm356_vm0 = vcmask (!%p704_p4), 130048  }
   0xf   : > { %369 = vmatprep.subr.bf16.mxu0 (!%p704_p4), %v839_v1  ;;  %748 = vmatprep.subr.bf16.mxu1 (!%p704_p4), %v839_v1  ;;  %v795_v4 = vld [vmem:[%s1019_s1 + $0x18] sm:$0xff] (!%p704_p4)   ;;  %v803_v5 = vld [vmem:[%s1018_s0 + $0x4] ss:$8 sps:$4 sm:$0xff] (!%p704_p4)   ;;  %v798_v9 = vld [vmem:[%s1019_s1 + $0x30] sm:$0xff] (!%p704_p4)   ;;  %vm438_vm1 = vcmask (!%p704_p4), 253952   ;;  %v840_v18 = vmov (!%p704_p4), 0.0  }
  0x10   : > { %370 = vmatpush1.bf16.msra.mxu0 (!%p704_p4), %v792_v0  ;;  %757 = vmatpush1.bf16.msra.mxu1 (!%p704_p4), %v792_v0  ;;  %v806_v6 = vld [vmem:[%s1018_s0 + $0x24] ss:$8 sps:$4 sm:$0xff] (!%p704_p4)   ;;  %v799_v10 = vld [vmem:[%s1019_s1 + $0x38] sm:$0xff] (!%p704_p4)   ;;  %v801_v12 = vld [vmem:[%s1018_s0] ss:$8 sps:$4 sm:$0xff] (!%p704_p4)   ;;  %vm442_vm2 = vcmask (!%p704_p4), 261120  }
  0x11   : > { %371 = vmatprep.subr.bf16.mxu0 (!%p704_p4), %v839_v1  ;;  %749 = vmatprep.subr.bf16.mxu1 (!%p704_p4), %v839_v1  ;;  %v796_v7 = vld [vmem:[%s1019_s1 + $0x20] sm:$0xff] (!%p704_p4)   ;;  %v797_v8 = vld [vmem:[%s1019_s1 + $0x28] sm:$0xff] (!%p704_p4)   ;;  %v807_v14 = vld [vmem:[%s1018_s0 + $0x14] ss:$8 sps:$4 sm:$0xff] (!%p704_p4)   ;;  %439 = vst.msk [vmem:[#allocation2] sm:$0x1] (!%p704_p4), %vm438_vm1, %v840_v18 }
  0x12   : > { %722 = vmatprep.mubr.msk.bf16.mxu0 (!%p704_p4), %vm356_vm0, %v803_v5  ;;  %724 = vmatprep.mubr.msk.bf16.mxu1 (!%p704_p4), %vm356_vm0, %v806_v6  ;;  %v800_v11 = vld [vmem:[%s1019_s1 + $0x40] sm:$0xff] (!%p704_p4)   ;;  %v810_v15 = vld [vmem:[%s1018_s0 + $0x34] ss:$8 sps:$4 sm:$0xff] (!%p704_p4)   ;;  %v809_v16 = vld [vmem:[%s1018_s0 + $0x10] ss:$8 sps:$4 sm:$0xff] (!%p704_p4)  }
  0x13   : > { %v804_v13 = vld [vmem:[%s1018_s0 + $0x20] ss:$8 sps:$4 sm:$0xff] (!%p704_p4)   ;;  %v812_v17 = vld [vmem:[%s1018_s0 + $0x30] ss:$8 sps:$4 sm:$0xff] (!%p704_p4)   ;;  %440 = vst.msk [vmem:[#allocation3] sm:$0x1] (!%p704_p4), %vm438_vm1, %v840_v18 }
  0x14   : > { %372 = vmatpush1.bf16.msra.mxu0 (!%p704_p4), %v793_v2  ;;  %758 = vmatpush1.bf16.msra.mxu1 (!%p704_p4), %v793_v2 }
  0x15   : > { %373 = vmatprep.subr.bf16.mxu0 %v839_v1  ;;  %750 = vmatprep.subr.bf16.mxu1 %v839_v1 }
  0x18   : > { %374 = vmatpush1.bf16.msra.mxu0 %v794_v3  ;;  %759 = vmatpush1.bf16.msra.mxu1 %v794_v3  ;;  %v441_v18 = vld [vmem:[#allocation2] sm:$0x1] }
  0x19   : > { %375 = vmatprep.subr.bf16.mxu0 %v839_v1  ;;  %751 = vmatprep.subr.bf16.mxu1 %v839_v1 }
  0x1c   : > { %376 = vmatpush1.bf16.msra.mxu0 %v795_v4  ;;  %760 = vmatpush1.bf16.msra.mxu1 %v795_v4 }
  0x1d   : > { %377 = vmatprep.subr.bf16.mxu0 %v839_v1  ;;  %752 = vmatprep.subr.bf16.mxu1 %v839_v1 }
  0x20   : > { %378 = vmatpush1.bf16.msra.mxu0 %v796_v7  ;;  %761 = vmatpush1.bf16.msra.mxu1 %v796_v7 }
  0x21   : > { %379 = vmatprep.subr.bf16.mxu0 %v839_v1  ;;  %753 = vmatprep.subr.bf16.mxu1 %v839_v1 }
  0x24   : > { %380 = vmatpush1.bf16.msra.mxu0 %v797_v8  ;;  %762 = vmatpush1.bf16.msra.mxu1 %v797_v8 }
  0x25   : > { %381 = vmatprep.subr.bf16.mxu0 %v839_v1  ;;  %754 = vmatprep.subr.bf16.mxu1 %v839_v1 }
  0x28   : > { %382 = vmatpush1.bf16.msra.mxu0 %v798_v9  ;;  %763 = vmatpush1.bf16.msra.mxu1 %v798_v9 }
  0x29   : > { %383 = vmatprep.subr.bf16.mxu0 %v839_v1  ;;  %755 = vmatprep.subr.bf16.mxu1 %v839_v1 }
  0x2c   : > { %384 = vmatpush1.bf16.msra.mxu0 %v799_v10  ;;  %764 = vmatpush1.bf16.msra.mxu1 %v799_v10 }
  0x2d   : > { %385 = vmatprep.subr.bf16.mxu0 %v839_v1  ;;  %756 = vmatprep.subr.bf16.mxu1 %v839_v1 }
  0x30   : > { %386 = vmatpush1.bf16.msra.mxu0 %v800_v11  ;;  %765 = vmatpush1.bf16.msra.mxu1 %v800_v11 }
  0x33   : > { %402 = vmatmul.mubr.bf16.vlgmr.msra.gmra.mrb[0].mxu0 %v801_v12  ;;  %418 = vmatmul.mubr.bf16.vlgmr.msra.gmra.mrb[0].mxu1 %v804_v13 }
  0x34   : > { %723 = vmatprep.mubr.msk.bf16.mxu0 %vm356_vm0, %v807_v14  ;;  %725 = vmatprep.mubr.msk.bf16.mxu1 %vm356_vm0, %v810_v15 }
  0x3b   : > { %410 = vmatmul.mubr.bf16.gmra.mrb[4].mxu0 %v809_v16  ;;  %426 = vmatmul.mubr.bf16.gmra.mrb[4].mxu1 %v812_v17 }
 0x106   : > { %v403_v19 = vpop.f32.mrb[0].mxu0  ;;  %v419_v20 = vpop.f32.mrb[0].mxu1 }
 0x107   : > { %v468_v21 = vmul.f32 %v403_v19, %v403_v19  ;;  %501 = vst.msk [vmem:[#allocation4] sm:$0xff] %vm442_vm2, %v403_v19  ;;  %v405_v22 = vpop.f32.mrb[1].mxu0  ;;  %505 = vst.msk [vmem:[#allocation4 + $0x20] sm:$0xff] %vm442_vm2, %v419_v20  ;;  %v421_v23 = vpop.f32.mrb[1].mxu1  ;;  %v443_v26 = vsel %vm442_vm2, %v403_v19, 0.0  ;;  %v472_v44 = vmul.f32 %v419_v20, %v419_v20  ;;  %v450_v52 = vsel %vm442_vm2, %v419_v20, 0.0 }
 0x108   : > { %v406_v24 = vpop.f32.mrb[2].mxu0  ;;  %v422_v25 = vpop.f32.mrb[2].mxu1 }
 0x109   : > { %v444_v27 = vsel %vm442_vm2, %v406_v24, 0.0  ;;  %v469_v28 = vmul.f32 %v406_v24, %v406_v24  ;;  %502 = vst.msk [vmem:[#allocation4 + $0x8] sm:$0xff] %vm442_vm2, %v406_v24  ;;  %v408_v29 = vpop.f32.mrb[3].mxu0  ;;  %506 = vst.msk [vmem:[#allocation4 + $0x28] sm:$0xff] %vm442_vm2, %v422_v25  ;;  %v424_v30 = vpop.f32.mrb[3].mxu1  ;;  %v476_v32 = vsel %vm442_vm2, %v468_v21, 0.0  ;;  %v473_v53 = vmul.f32 %v422_v25, %v422_v25 }
 0x10a   : > { %v445_v31 = vadd.f32 %v444_v27, %v443_v26  ;;  %v483_v58 = vsel %vm442_vm2, %v472_v44, 0.0  ;;  %v452_v59 = vsel %vm442_vm2, %v422_v25, 0.0  ;;  %v467_v21 = vld [vmem:[#allocation3] sm:$0x1] }
 0x10b   : > { %v477_v33 = vsel %vm442_vm2, %v469_v28, 0.0  ;;  %v485_v63 = vsel %vm442_vm2, %v473_v53, 0.0 }
 0x10c   : > { %v478_v34 = vadd.f32 %v477_v33, %v476_v32 }
 0x10e   : > { %v411_v35 = vpop.f32.mrb[4].mxu0  ;;  %v427_v36 = vpop.f32.mrb[4].mxu1 }
 0x10f   : > { %v446_v37 = vsel %vm442_vm2, %v411_v35, 0.0  ;;  %v470_v38 = vmul.f32 %v411_v35, %v411_v35  ;;  %503 = vst.msk [vmem:[#allocation4 + $0x10] sm:$0xff] %vm442_vm2, %v411_v35  ;;  %v413_v39 = vpop.f32.mrb[5].mxu0  ;;  %507 = vst.msk [vmem:[#allocation4 + $0x30] sm:$0xff] %vm442_vm2, %v427_v36  ;;  %v429_v40 = vpop.f32.mrb[5].mxu1  ;;  %v474_v55 = vmul.f32 %v427_v36, %v427_v36  ;;  %v454_v60 = vsel %vm442_vm2, %v427_v36, 0.0 }
 0x110   : > { %v447_v41 = vadd.f32 %v446_v37, %v445_v31  ;;  %v414_v42 = vpop.f32.mrb[6].mxu0  ;;  %v430_v43 = vpop.f32.mrb[6].mxu1 }
 0x111   : > { %v479_v45 = vsel %vm442_vm2, %v470_v38, 0.0  ;;  %v448_v46 = vsel %vm442_vm2, %v414_v42, 0.0  ;;  %v471_v47 = vmul.f32 %v414_v42, %v414_v42  ;;  %504 = vst.msk [vmem:[#allocation4 + $0x18] sm:$0xff] %vm442_vm2, %v414_v42  ;;  %v416_v48 = vpop.f32.mrb[7].mxu0  ;;  %508 = vst.msk [vmem:[#allocation4 + $0x38] sm:$0xff] %vm442_vm2, %v430_v43  ;;  %v432_v49 = vpop.f32.mrb[7].mxu1  ;;  %v475_v1 = vmul.f32 %v430_v43, %v430_v43 }
 0x112   : > { %v480_v50 = vadd.f32 %v479_v45, %v478_v34  ;;  %v449_v51 = vadd.f32 %v448_v46, %v447_v41  ;;  %v487_v0 = vsel %vm442_vm2, %v474_v55, 0.0  ;;  %v456_v4 = vsel %vm442_vm2, %v430_v43, 0.0 }
 0x113   : > { %v481_v54 = vsel %vm442_vm2, %v471_v47, 0.0  ;;  %v489_v7 = vsel %vm442_vm2, %v475_v1, 0.0 }
 0x114   : > { %v451_v56 = vadd.f32 %v450_v52, %v449_v51  ;;  %v482_v57 = vadd.f32 %v481_v54, %v480_v50 }
 0x116   : > { %v484_v61 = vadd.f32 %v483_v58, %v482_v57  ;;  %v453_v62 = vadd.f32 %v452_v59, %v451_v56 }
 0x118   : > { %v455_v2 = vadd.f32 %v454_v60, %v453_v62  ;;  %v486_v3 = vadd.f32 %v485_v63, %v484_v61 }
 0x11a   : > { %v488_v5 = vadd.f32 %v487_v0, %v486_v3  ;;  %v457_v6 = vadd.f32 %v456_v4, %v455_v2 }
 0x11c   : > { %v458_v8 = vrot.slane %v457_v6, 4  ;;  %v490_v9 = vadd.f32 %v489_v7, %v488_v5 }
 0x11e   : > { %v459_v10 = vadd.f32 %v458_v8, %v457_v6  ;;  %v491_v11 = vrot.slane %v490_v9, 4 }
 0x120   : > { %v460_v12 = vrot.slane %v459_v10, 2  ;;  %v492_v13 = vadd.f32 %v491_v11, %v490_v9 }
 0x122   : > { %v461_v14 = vadd.f32 %v460_v12, %v459_v10  ;;  %v493_v15 = vrot.slane %v492_v13, 2 }
 0x124   : > { %v462_v16 = vrot.slane %v461_v14, 1  ;;  %v494_v17 = vadd.f32 %v493_v15, %v492_v13 }
 0x126   : > { %v463_v19 = vadd.f32 %v462_v16, %v461_v14  ;;  %v495_v20 = vrot.slane %v494_v17, 1 }
 0x128   : > { %v464_v22 = vadd.f32 %v463_v19, %v441_v18  ;;  %v496_v23 = vadd.f32 %v495_v20, %v494_v17 }
 0x12a   : > { %466 = vst.msk [vmem:[#allocation2] sm:$0x1] %vm438_vm1, %v464_v22  ;;  %v497_v24 = vadd.f32 %v496_v23, %v467_v21 }
 0x12c   : > { %498 = vst.msk [vmem:[#allocation3] sm:$0x1] %vm438_vm1, %v497_v24 }
 0x12d PF: > { %p726_p5 = scmp.ne.s32.totalorder %s829_s15, 1 }
 0x12e   : > { %v535_v31 = vlaneseq (!%p726_p5)  ;;  %v515_v37 = vld [vmem:[#allocation4] sm:$0xff] (!%p726_p5)  ;;  %v530_v38 = vld [vmem:[%s1020_s2] sm:$0x1] (!%p726_p5)  ;;  %v516_v39 = vld [vmem:[#allocation4 + $0x8] sm:$0xff] (!%p726_p5)  ;;  %vm617_vm3 = vcmask (!%p726_p5), 257024  }
 0x12f   : > { %512 = sbr.rel (%p726_p5) target bundleno = 343 (0x157), region = 48  ;;  %v517_v40 = vld [vmem:[#allocation4 + $0x10] sm:$0xff] (!%p726_p5)  ;;  %v518_v41 = vld [vmem:[#allocation4 + $0x18] sm:$0xff] (!%p726_p5)  ;;  %v519_v42 = vld [vmem:[#allocation4 + $0x20] sm:$0xff] (!%p726_p5) }
 0x130   : > { %v536_v34 = vshrl.u32 (!%p726_p5), %v535_v31, 7  ;;  %v520_v43 = vld [vmem:[#allocation4 + $0x28] sm:$0xff] (!%p726_p5)  ;;  %v521_v44 = vld [vmem:[#allocation4 + $0x30] sm:$0xff] (!%p726_p5)  ;;  %v522_v45 = vld [vmem:[#allocation4 + $0x38] sm:$0xff] (!%p726_p5) }
 0x131   : > { %v523_v25 = vld [vmem:[#allocation2] sm:$0x1] (!%p726_p5) }
 0x132   : > { %v524_v27 = vmul.f32 (!%p726_p5), 0.015625, %v523_v25  ;;  %v537_v35 = vsub.s32 (!%p726_p5), 0, %v536_v34  ;;  %v727_v57 = vld [vmem:[%s1021_s3] ss:$0 sm:$0xff] (!%p726_p5) }
 0x133   : > { %v525_v26 = vld [vmem:[#allocation3] sm:$0x1] (!%p726_p5) }
 0x134   : > { %v526_v28 = vmul.f32 (!%p726_p5), 0.015625, %v525_v26  ;;  %v527_v29 = vmul.f32 (!%p726_p5), %v524_v27, %v524_v27  ;;  %v538_v36 = vrot.slane (!%p726_p5), %v524_v27, %v537_v35 }
 0x136   : > { %v528_v30 = vsub.f32 %v526_v28, %v527_v29  ;;  %v540_v47 = vsub.f32 %v515_v37, %v538_v36  ;;  %v541_v49 = vsub.f32 %v516_v39, %v538_v36  ;;  %v542_v50 = vsub.f32 %v517_v40, %v538_v36 }
 0x137   : > { %v543_v51 = vsub.f32 %v518_v41, %v538_v36  ;;  %v544_v52 = vsub.f32 %v519_v42, %v538_v36  ;;  %v545_v53 = vsub.f32 %v520_v43, %v538_v36  ;;  %v546_v54 = vsub.f32 %v521_v44, %v538_v36 }
 0x138   : > { %v529_v32 = vmax.f32 %v528_v30, 0.0  ;;  %v547_v55 = vsub.f32 %v522_v45, %v538_v36 }
 0x13a   : > { %v531_v33 = vadd.f32 1e-05, %v529_v32 }
 0x13c   : > { %813 = vrsqrt.f32 %v531_v33 }
 0x146   : > { %v814_v46 = vpop.eup %813 }
 0x147   : > { %v533_v48 = vmul.f32 %v814_v46, %v530_v38 }
 0x149   : > { %v552_v56 = vrot.slane %v533_v48, %v537_v35 }
 0x14b   : > { %v554_v58 = vmul.f32 %v552_v56, %v540_v47  ;;  %v555_v59 = vmul.f32 %v552_v56, %v541_v49  ;;  %v556_v60 = vmul.f32 %v552_v56, %v542_v50  ;;  %v557_v61 = vmul.f32 %v552_v56, %v543_v51 }
 0x14c   : > { %v558_v62 = vmul.f32 %v552_v56, %v544_v52  ;;  %v559_v63 = vmul.f32 %v552_v56, %v545_v53  ;;  %v560_v0 = vmul.f32 %v552_v56, %v546_v54  ;;  %v561_v1 = vmul.f32 %v552_v56, %v547_v55 }
 0x14d   : > { %v569_v2 = vadd.f32 %v727_v57, %v554_v58  ;;  %v570_v3 = vadd.f32 %v727_v57, %v555_v59  ;;  %v571_v4 = vadd.f32 %v727_v57, %v556_v60  ;;  %v572_v5 = vadd.f32 %v727_v57, %v557_v61 }
 0x14e   : > { %v573_v6 = vadd.f32 %v727_v57, %v558_v62  ;;  %v574_v7 = vadd.f32 %v727_v57, %v559_v63  ;;  %v575_v8 = vadd.f32 %v727_v57, %v560_v0  ;;  %v576_v9 = vadd.f32 %v727_v57, %v561_v1 }
 0x14f   : > { %v577_v10 = vmax.f32 %v569_v2, 0.0  ;;  %v578_v11 = vmax.f32 %v570_v3, 0.0  ;;  %v579_v12 = vmax.f32 %v571_v4, 0.0  ;;  %v580_v13 = vmax.f32 %v572_v5, 0.0 }
 0x150   : > { %v581_v14 = vmax.f32 %v573_v6, 0.0  ;;  %v582_v15 = vmax.f32 %v574_v7, 0.0  ;;  %v583_v16 = vmax.f32 %v575_v8, 0.0  ;;  %v584_v17 = vmax.f32 %v576_v9, 0.0 }
 0x151   : > { %v740_v18 = vpack.c.bf16 %v577_v10, %v577_v10  ;;  %v741_v19 = vpack.c.bf16 %v578_v11, %v578_v11  ;;  %v742_v20 = vpack.c.bf16 %v579_v12, %v579_v12  ;;  %v743_v21 = vpack.c.bf16 %v580_v13, %v580_v13 }
 0x152   : > { %v744_v22 = vpack.c.bf16 %v581_v14, %v581_v14  ;;  %v745_v23 = vpack.c.bf16 %v582_v15, %v582_v15  ;;  %v746_v24 = vpack.c.bf16 %v583_v16, %v583_v16  ;;  %v747_v25 = vpack.c.bf16 %v584_v17, %v584_v17 }
 0x153   : > { %618 = vst.msk [vmem:[%s1022_s4] sm:$0xf] %vm617_vm3, %v740_v18  ;;  %619 = vst.msk [vmem:[%s1022_s4 + $0x4] sm:$0xf] %vm617_vm3, %v741_v19 }
 0x154   : > { %620 = vst.msk [vmem:[%s1022_s4 + $0x8] sm:$0xf] %vm617_vm3, %v742_v20  ;;  %621 = vst.msk [vmem:[%s1022_s4 + $0xc] sm:$0xf] %vm617_vm3, %v743_v21 }
 0x155   : > { %622 = vst.msk [vmem:[%s1022_s4 + $0x10] sm:$0xf] %vm617_vm3, %v744_v22  ;;  %623 = vst.msk [vmem:[%s1022_s4 + $0x14] sm:$0xf] %vm617_vm3, %v745_v23 }
 0x156   : > { %624 = vst.msk [vmem:[%s1022_s4 + $0x18] sm:$0xf] %vm617_vm3, %v746_v24  ;;  %625 = vst.msk [vmem:[%s1022_s4 + $0x1c] sm:$0xf] %vm617_vm3, %v747_v25 }
 0x157 PF: > { %s14_s17 = sadd.s32 1, %s837_s17   ;;  %s1023_s15 = smov %s833_s16 }
 0x158   : > { %p11_p6 = scmp.ge.s32.totalorder %s14_s17, 4   ;;  %s1024_s16 = smov %s1026_s18 }
 0x15a   :  { %13 = sbr.rel (!%p11_p6) target bundleno = 2 (0x2), region = 80 }

// kernel: adv_net_forward.7
= control target key start
LH: loop header
LB: loop body
LE: loop exit
PB: predicated region body
PF: predicated region fallthrough
CT: control target
= control target key end

     0   :  { %s830_s15 = smov 0   ;;  %s832_s16 = smov 0   ;;  %s940_s0 = inlined_call_operand.vmem [shape: bf16[16,288], index: 0, kind: input, shape index: {}]   ;;  %s941_s1 = inlined_call_operand.vmem [shape: bf16[288,64], index: 1, kind: input, shape index: {}]   ;;  %s942_s2 = inlined_call_operand.vmem [shape: f32[1,64], index: 2, kind: input, shape index: {}]   ;;  %s943_s3 = inlined_call_operand.vmem [shape: f32[1,64], index: 3, kind: input, shape index: {}]   ;;  %s944_s4 = inlined_call_operand.vmem [shape: bf16[16,64], index: 4, kind: output, shape index: {}]  }
   0x1   :  { %s834_s17 = smov 0  }
   0x2 LB: > { %s26_s18 = sadd.s32 1, %s797_s16  ;;  %p662_p0 = scmp.ge.s32.totalorder %s801_s17, 1  ;;  %s801_s17 = sphi %s834_s17, %s14_s17   ;;  %s797_s16 = sphi %s832_s16, %s946_s16   ;;  %s793_s15 = sphi %s830_s15, %s945_s15  }
   0x3   : > { %p28_p1 = scmp.ge.s32.totalorder %s26_s18, 2  ;;  %p186_p2 = scmp.lt.s32.totalorder %s801_s17, 3 }
   0x5   : > { %s948_s18 = smov (%p28_p1, %s26_s18), 0  ;;  %p187_p3 = pnand %p662_p0, %p186_p2 }
   0x6   : > { %p663_p4 = scmp.ne.s32.totalorder (!%p187_p3), %s793_s15, 0 }
   0x7   : > { %190 = sbr.rel (%p187_p3) target bundleno = 325 (0x145), region = 36 }
   0xe   : > { %239 = sbr.rel (%p663_p4) target bundleno = 286 (0x11e), region = 40  ;;  %v755_v0 = vld [vmem:[%s941_s1 + $0x40] sm:$0xff] (!%p663_p4)   ;;  %v803_v2 = vmov (!%p663_p4), 0.0   ;;  %vm493_vm0 = vcmask (!%p663_p4), 516096   ;;  %v757_v3 = vld [vmem:[%s941_s1 + $0x48] sm:$0xff] (!%p663_p4)   ;;  %vm804_vm1 = vmmov (!%p663_p4), 0  }
   0xf   : > { %v756_v1 = vld [vmem:[%s941_s1] sm:$0xff] (!%p663_p4)   ;;  %721 = vmatprep.subr.bf16.mxu1 (!%p663_p4), %v803_v2  ;;  %696 = vmatprep.subr.bf16.mxu0 (!%p663_p4), %v755_v0  ;;  %494 = vst.msk [vmem:[#allocation2] sm:$0x1] (!%p663_p4), %vm493_vm0, %v803_v2  ;;  %495 = vst.msk [vmem:[#allocation3] sm:$0x1] (!%p663_p4), %vm493_vm0, %v803_v2  ;;  %v758_v4 = vld [vmem:[%s941_s1 + $0x8] sm:$0xff] (!%p663_p4)  }
  0x10   : > { %697 = vmatpush3.bf16.msra.mxu0 (!%p663_p4), %v756_v1  ;;  %725 = vmatprep.mubr.msk.bf16.mxu1 (!%p663_p4), %vm804_vm1, %v803_v2  ;;  %v759_v5 = vld [vmem:[%s941_s1 + $0x50] sm:$0xff] (!%p663_p4)   ;;  %v761_v7 = vld [vmem:[%s941_s1 + $0x58] sm:$0xff] (!%p663_p4)   ;;  %v763_v9 = vld [vmem:[%s941_s1 + $0x60] sm:$0xff] (!%p663_p4)   ;;  %vm403_vm2 = vcmask (!%p663_p4), 261120   ;;  %vm497_vm3 = vcmask (!%p663_p4), 523264  }
  0x11   : > { %698 = vmatprep.subr.bf16.mxu0 (!%p663_p4), %v757_v3  ;;  %v760_v6 = vld [vmem:[%s941_s1 + $0x10] sm:$0xff] (!%p663_p4)   ;;  %v762_v8 = vld [vmem:[%s941_s1 + $0x18] sm:$0xff] (!%p663_p4)   ;;  %v769_v10 = vld [vmem:[%s941_s1 + $0x80] sm:$0xff] (!%p663_p4)  }
  0x12   : > { %v764_v11 = vld [vmem:[%s941_s1 + $0x20] sm:$0xff] (!%p663_p4)   ;;  %v765_v12 = vld [vmem:[%s941_s1 + $0x68] sm:$0xff] (!%p663_p4)   ;;  %722 = vmatpush3.bf16.msra.mxu1 (!%p663_p4), %v769_v10  ;;  %v767_v16 = vld [vmem:[%s941_s1 + $0x70] sm:$0xff] (!%p663_p4)  }
  0x13   : > { %723 = vmatprep.subr.bf16.mxu1 (!%p663_p4), %v803_v2  ;;  %v772_v13 = vld [vmem:[%s941_s1 + $0x88] sm:$0xff] (!%p663_p4)   ;;  %v775_v15 = vld [vmem:[%s940_s0 + $0x4] ss:$12 sps:$4 sm:$0xff] (!%p663_p4)   ;;  %v770_v19 = vld [vmem:[%s941_s1 + $0x78] sm:$0xff] (!%p663_p4)  }
  0x14   : > { %699 = vmatpush3.bf16.msra.mxu0 (!%p663_p4), %v758_v4  ;;  %v766_v14 = vld [vmem:[%s941_s1 + $0x28] sm:$0xff] (!%p663_p4)   ;;  %439 = vmatprep.mubr.bf16.mxu0 (!%p663_p4), %v775_v15  ;;  %v768_v18 = vld [vmem:[%s941_s1 + $0x30] sm:$0xff] (!%p663_p4)   ;;  %v771_v20 = vld [vmem:[%s941_s1 + $0x38] sm:$0xff] (!%p663_p4)  }
  0x15   : > { %700 = vmatprep.subr.bf16.mxu0 %v759_v5  ;;  %v776_v17 = vld [vmem:[%s940_s0 + $0x8] ss:$12 sps:$4 sm:$0xff]   ;;  %v773_v21 = vld [vmem:[%s940_s0] ss:$12 sps:$4 sm:$0xff]  }
  0x16   : > { %724 = vmatpush3.bf16.msra.mxu1 %v772_v13  ;;  %v496_v51 = vld [vmem:[#allocation2] sm:$0x1]  ;;  %v510_v54 = vld [vmem:[#allocation3] sm:$0x1] }
  0x18   : > { %701 = vmatpush3.bf16.msra.mxu0 %v760_v6 }
  0x19   : > { %702 = vmatprep.subr.bf16.mxu0 %v761_v7  ;;  %726 = vmatmul.mubr.msk.bf16.vlgmr.msra.gmra.mrb[0].mxu1 %vm403_vm2, %v776_v17 }
  0x1c   : > { %703 = vmatpush3.bf16.msra.mxu0 %v762_v8 }
  0x1d   : > { %704 = vmatprep.subr.bf16.mxu0 %v763_v9 }
  0x20   : > { %705 = vmatpush3.bf16.msra.mxu0 %v764_v11 }
  0x21   : > { %706 = vmatprep.subr.bf16.mxu0 %v765_v12 }
  0x24   : > { %707 = vmatpush3.bf16.msra.mxu0 %v766_v14 }
  0x25   : > { %708 = vmatprep.subr.bf16.mxu0 %v767_v16 }
  0x28   : > { %709 = vmatpush3.bf16.msra.mxu0 %v768_v18 }
  0x29   : > { %710 = vmatprep.subr.bf16.mxu0 %v770_v19 }
  0x2c   : > { %711 = vmatpush3.bf16.msra.mxu0 %v771_v20 }
  0x2f   : > { %440 = vmatmul.mubr.bf16.vlgmr.msra.gmra.mrb[0].mxu0 %v773_v21 }
  0xec   : > { %v482_v22 = vpop.f32.mrb[0].mxu1 }
  0xed   : > { %v727_v23 = vpop.f32.mrb[1].mxu1 }
  0xee   : > { %v485_v24 = vpop.f32.mrb[2].mxu1 }
  0xef   : > { %v728_v25 = vpop.f32.mrb[3].mxu1 }
 0x102   : > { %v712_v26 = vpop.f32.mrb[0].mxu0 }
 0x103   : > { %v713_v27 = vpop.f32.mrb[1].mxu0 }
 0x104   : > { %v714_v28 = vadd.f32 %v713_v27, %v712_v26  ;;  %v715_v29 = vpop.f32.mrb[2].mxu0 }
 0x105   : > { %v716_v30 = vpop.f32.mrb[3].mxu0 }
 0x106   : > { %v483_v31 = vadd.f32 %v714_v28, %v482_v22  ;;  %v717_v32 = vadd.f32 %v716_v30, %v715_v29 }
 0x108   : > { %v511_v33 = vmul.f32 %v483_v31, %v483_v31  ;;  %526 = vst.msk [vmem:[#allocation4] sm:$0xff] %vm497_vm3, %v483_v31  ;;  %v486_v34 = vadd.f32 %v717_v32, %v485_v24  ;;  %v498_v35 = vsel %vm497_vm3, %v483_v31, 0.0 }
 0x10a   : > { %v499_v36 = vsel %vm497_vm3, %v486_v34, 0.0  ;;  %v512_v37 = vmul.f32 %v486_v34, %v486_v34  ;;  %527 = vst.msk [vmem:[#allocation4 + $0x8] sm:$0xff] %vm497_vm3, %v486_v34  ;;  %v513_v39 = vsel %vm497_vm3, %v511_v33, 0.0 }
 0x10b   : > { %v500_v38 = vadd.f32 %v499_v36, %v498_v35 }
 0x10c   : > { %v514_v40 = vsel %vm497_vm3, %v512_v37, 0.0 }
 0x10d   : > { %v501_v41 = vrot.slane %v500_v38, 4  ;;  %v515_v42 = vadd.f32 %v514_v40, %v513_v39 }
 0x10f   : > { %v502_v43 = vadd.f32 %v501_v41, %v500_v38  ;;  %v516_v44 = vrot.slane %v515_v42, 4 }
 0x111   : > { %v503_v45 = vrot.slane %v502_v43, 2  ;;  %v517_v46 = vadd.f32 %v516_v44, %v515_v42 }
 0x113   : > { %v504_v47 = vadd.f32 %v503_v45, %v502_v43  ;;  %v518_v48 = vrot.slane %v517_v46, 2 }
 0x115   : > { %v505_v49 = vrot.slane %v504_v47, 1  ;;  %v519_v50 = vadd.f32 %v518_v48, %v517_v46 }
 0x117   : > { %v506_v52 = vadd.f32 %v505_v49, %v504_v47  ;;  %v520_v53 = vrot.slane %v519_v50, 1 }
 0x119   : > { %v507_v55 = vadd.f32 %v506_v52, %v496_v51  ;;  %v521_v56 = vadd.f32 %v520_v53, %v519_v50 }
 0x11b   : > { %509 = vst.msk [vmem:[#allocation2] sm:$0x1] %vm493_vm0, %v507_v55  ;;  %v522_v57 = vadd.f32 %v521_v56, %v510_v54 }
 0x11d   : > { %523 = vst.msk [vmem:[#allocation3] sm:$0x1] %vm493_vm0, %v522_v57 }
 0x11e PF: > { %p686_p5 = scmp.ne.s32.totalorder %s793_s15, 1 }
 0x11f   : > { %v548_v0 = vlaneseq (!%p686_p5)  ;;  %v534_v6 = vld [vmem:[#allocation4] sm:$0xff] (!%p686_p5)  ;;  %v543_v7 = vld [vmem:[%s942_s2] sm:$0x1] (!%p686_p5)  ;;  %v535_v8 = vld [vmem:[#allocation4 + $0x8] sm:$0xff] (!%p686_p5)  ;;  %vm582_vm4 = vcmask (!%p686_p5), 519168  }
 0x120   : > { %531 = sbr.rel (%p686_p5) target bundleno = 325 (0x145), region = 48  ;;  %v687_v14 = vld [vmem:[%s943_s3] ss:$0 sm:$0xff] (!%p686_p5) }
 0x121   : > { %v549_v3 = vshrl.u32 (!%p686_p5), %v548_v0, 7 }
 0x122   : > { %v536_v58 = vld [vmem:[#allocation2] sm:$0x1] (!%p686_p5) }
 0x123   : > { %v537_v60 = vmul.f32 (!%p686_p5), 0.0625, %v536_v58  ;;  %v550_v4 = vsub.s32 (!%p686_p5), 0, %v549_v3 }
 0x124   : > { %v538_v59 = vld [vmem:[#allocation3] sm:$0x1] (!%p686_p5) }
 0x125   : > { %v539_v61 = vmul.f32 (!%p686_p5), 0.0625, %v538_v59  ;;  %v540_v62 = vmul.f32 (!%p686_p5), %v537_v60, %v537_v60  ;;  %v551_v5 = vrot.slane (!%p686_p5), %v537_v60, %v550_v4 }
 0x127   : > { %v541_v63 = vsub.f32 %v539_v61, %v540_v62  ;;  %v553_v11 = vsub.f32 %v534_v6, %v551_v5  ;;  %v554_v12 = vsub.f32 %v535_v8, %v551_v5 }
 0x129   : > { %v542_v1 = vmax.f32 %v541_v63, 0.0 }
 0x12b   : > { %v544_v2 = vadd.f32 1e-05, %v542_v1 }
 0x12d   : > { %777 = vrsqrt.f32 %v544_v2 }
 0x137   : > { %v778_v9 = vpop.eup %777 }
 0x138   : > { %v546_v10 = vmul.f32 %v778_v9, %v543_v7 }
 0x13a   : > { %v559_v13 = vrot.slane %v546_v10, %v550_v4 }
 0x13c   : > { %v561_v15 = vmul.f32 %v559_v13, %v553_v11  ;;  %v562_v16 = vmul.f32 %v559_v13, %v554_v12 }
 0x13e   : > { %v570_v17 = vadd.f32 %v687_v14, %v561_v15  ;;  %v571_v18 = vadd.f32 %v687_v14, %v562_v16 }
 0x140   : > { %v572_v19 = vmax.f32 %v570_v17, 0.0  ;;  %v573_v20 = vmax.f32 %v571_v18, 0.0 }
 0x142   : > { %v694_v21 = vpack.c.bf16 %v572_v19, %v572_v19  ;;  %v695_v22 = vpack.c.bf16 %v573_v20, %v573_v20 }
 0x144   : > { %583 = vst.msk [vmem:[%s944_s4] sm:$0xf] %vm582_vm4, %v694_v21  ;;  %584 = vst.msk [vmem:[%s944_s4 + $0x4] sm:$0xf] %vm582_vm4, %v695_v22 }
 0x145 PF: > { %s14_s17 = sadd.s32 1, %s801_s17   ;;  %s945_s15 = smov %s797_s16 }
 0x146   : > { %p11_p6 = scmp.ge.s32.totalorder %s14_s17, 4   ;;  %s946_s16 = smov %s948_s18 }
 0x148   :  { %13 = sbr.rel (!%p11_p6) target bundleno = 2 (0x2), region = 80 }

// kernel: adv_net_forward.9
= control target key start
LH: loop header
LB: loop body
LE: loop exit
PB: predicated region body
PF: predicated region fallthrough
CT: control target
= control target key end

     0   :  { %v292_v6 = vmov 1966171168   ;;  %v69_v8 = vlaneseq  ;;  %vm224_vm0 = vcmask 1024   ;;  %s370_s1 = inlined_call_operand.vmem [shape: bf16[256,1], index: 1, kind: input, shape index: {}]   ;;  %s371_s0 = inlined_call_operand.vmem [shape: bf16[2,256], index: 0, kind: input, shape index: {}]   ;;  %s372_s2 = inlined_call_operand.<no memory space> [shape: f32[1,1], index: 2, kind: input, shape index: {}]   ;;  %s373_s3 = inlined_call_operand.vmem [shape: f32[2,1], index: 3, kind: output, shape index: {}]  }
   0x1   :  { %v272_v0 = vld [vmem:[%s370_s1 + $0x40] sm:$0xff]   ;;  %v274_v2 = vld [vmem:[%s370_s1 + $0x48] sm:$0xff]   ;;  %v276_v4 = vld [vmem:[%s370_s1 + $0x50] sm:$0xff]   ;;  %v67_v7 = vunpack.c.l.s4 %v292_v6  ;;  %v8_v26 = vstv %s372_s2 }
   0x2   :  { %v273_v1 = vld [vmem:[%s370_s1] sm:$0xff]   ;;  %249 = vmatprep.subr.bf16.mxu0 %v272_v0  ;;  %v275_v3 = vld [vmem:[%s370_s1 + $0x8] sm:$0xff]   ;;  %v277_v5 = vld [vmem:[%s370_s1 + $0x10] sm:$0xff]   ;;  %v70_v12 = vshrl.u32 %v69_v8, 7  ;;  %9 = vst [vmem:[#allocation2] sm:$0x1] %v8_v26 }
   0x3   :  { %250 = vmatpush3.bf16.msra.mxu0 %v273_v1  ;;  %v278_v9 = vld [vmem:[%s370_s1 + $0x58] sm:$0xff]   ;;  %v68_v11 = vunpack.c.0.s8 %v67_v7  ;;  %v280_v13 = vld [vmem:[%s370_s1 + $0x60] sm:$0xff]   ;;  %v282_v16 = vld [vmem:[%s370_s1 + $0x68] sm:$0xff]  }
   0x4   :  { %251 = vmatprep.subr.bf16.mxu0 %v274_v2  ;;  %v279_v10 = vld [vmem:[%s370_s1 + $0x18] sm:$0xff]   ;;  %v281_v14 = vld [vmem:[%s370_s1 + $0x20] sm:$0xff]   ;;  %v283_v19 = vld [vmem:[%s370_s1 + $0x28] sm:$0xff]  }
   0x5   :  { %v71_v15 = vsub.s32 %v68_v11, %v70_v12  ;;  %v231_v17 = vld.sshfl [vmem:[%s371_s0] sm:$0x11 pattern:$0x75316420]  ;;  %v284_v21 = vld [vmem:[%s370_s1 + $0x70] sm:$0xff]   ;;  %v286_v23 = vld [vmem:[%s370_s1 + $0x78] sm:$0xff]  }
   0x6   :  { %v65_v18 = vcombine.high %v231_v17, %v231_v17  ;;  %v285_v22 = vld [vmem:[%s370_s1 + $0x30] sm:$0xff]   ;;  %v287_v24 = vld [vmem:[%s370_s1 + $0x38] sm:$0xff]  }
   0x7   :  { %252 = vmatpush3.bf16.msra.mxu0 %v275_v3  ;;  %v72_v25 = vrot.slane %v231_v17, %v71_v15 }
   0x8   :  { %253 = vmatprep.subr.bf16.mxu0 %v276_v4  ;;  %v79_v20 = vrot.slane %v65_v18, %v71_v15 }
   0x9   :  { %v230_v28 = vld [vmem:[#allocation2] ss:$0 sm:$0xff] }
   0xa   :  { %210 = vmatprep.mubr.bf16.mxu0 %v79_v20 }
   0xb   :  { %254 = vmatpush3.bf16.msra.mxu0 %v277_v5 }
   0xc   :  { %255 = vmatprep.subr.bf16.mxu0 %v278_v9 }
   0xf   :  { %256 = vmatpush3.bf16.msra.mxu0 %v279_v10 }
  0x10   :  { %257 = vmatprep.subr.bf16.mxu0 %v280_v13 }
  0x13   :  { %258 = vmatpush3.bf16.msra.mxu0 %v281_v14 }
  0x14   :  { %259 = vmatprep.subr.bf16.mxu0 %v282_v16 }
  0x17   :  { %260 = vmatpush3.bf16.msra.mxu0 %v283_v19 }
  0x18   :  { %261 = vmatprep.subr.bf16.mxu0 %v284_v21 }
  0x1b   :  { %262 = vmatpush3.bf16.msra.mxu0 %v285_v22 }
  0x1c   :  { %263 = vmatprep.subr.bf16.mxu0 %v286_v23 }
  0x1f   :  { %264 = vmatpush3.bf16.msra.mxu0 %v287_v24 }
  0x22   :  { %211 = vmatmul.mubr.bf16.vlgmr.msra.gmra.mrb[0].mxu0 %v72_v25 }
  0xf5   :  { %v265_v27 = vpop.f32.mrb[0].mxu0 }
  0xf6   :  { %v266_v29 = vpop.f32.mrb[1].mxu0 }
  0xf7   :  { %v267_v30 = vadd.f32 %v266_v29, %v265_v27  ;;  %v268_v31 = vpop.f32.mrb[2].mxu0 }
  0xf8   :  { %v269_v32 = vpop.f32.mrb[3].mxu0 }
  0xf9   :  { %v213_v33 = vadd.f32 %v267_v30, %v230_v28 }
  0xfb   :  { %v248_v34 = vmul.f32 -1.442695, %v213_v33 }
  0xfd   :  { %288 = vpow2.f32 %v248_v34 }
 0x107   :  { %v289_v35 = vpop.eup %288 }
 0x108   :  { %v221_v36 = vadd.f32 1.0, %v289_v35 }
 0x10a   :  { %290 = vrcp.f32 %v221_v36 }
 0x114   :  { %v291_v37 = vpop.eup %290 }
 0x115   :  { %225 = vst.msk [vmem:[%s373_s3] sm:$0x3] %vm224_vm0, %v291_v37 }

// kernel: adv_net_forward.8
= control target key start
LH: loop header
LB: loop body
LE: loop exit
PB: predicated region body
PF: predicated region fallthrough
CT: control target
= control target key end

     0   :  { %s1059_s15 = smov 0   ;;  %s1061_s16 = smov 0   ;;  %s1220_s0 = inlined_call_operand.vmem [shape: bf16[4,576], index: 0, kind: input, shape index: {}]   ;;  %s1221_s1 = inlined_call_operand.vmem [shape: bf16[576,128], index: 1, kind: input, shape index: {}]   ;;  %s1222_s2 = inlined_call_operand.vmem [shape: f32[1,128], index: 2, kind: input, shape index: {}]   ;;  %s1223_s3 = inlined_call_operand.vmem [shape: f32[1,128], index: 3, kind: input, shape index: {}]   ;;  %s1224_s4 = inlined_call_operand.vmem [shape: bf16[4,128], index: 4, kind: output, shape index: {}]  }
   0x1   :  { %s1063_s17 = smov 0  }
   0x2 LB: > { %s26_s18 = sadd.s32 1, %s1025_s16  ;;  %p829_p0 = scmp.ge.s32.totalorder %s1029_s17, 1  ;;  %s1029_s17 = sphi %s1063_s17, %s14_s17   ;;  %s1025_s16 = sphi %s1061_s16, %s1226_s16   ;;  %s1021_s15 = sphi %s1059_s15, %s1225_s15  }
   0x3   : > { %p28_p1 = scmp.ge.s32.totalorder %s26_s18, 2  ;;  %p184_p2 = scmp.lt.s32.totalorder %s1029_s17, 3 }
   0x5   : > { %s1228_s18 = smov (%p28_p1, %s26_s18), 0  ;;  %p185_p3 = pnand %p829_p0, %p184_p2 }
   0x6   : > { %p830_p4 = scmp.ne.s32.totalorder (!%p185_p3), %s1021_s15, 0 }
   0x7   : > { %188 = sbr.rel (%p185_p3) target bundleno = 359 (0x167), region = 36 }
   0xe   : > { %231 = sbr.rel (%p830_p4) target bundleno = 296 (0x128), region = 40  ;;  %v964_v0 = vld [vmem:[%s1221_s1 + $0x40] sm:$0xff] (!%p830_p4)   ;;  %v1031_v2 = vmov (!%p830_p4), 0.0   ;;  %v968_v5 = vld [vmem:[%s1221_s1 + $0x48] sm:$0xff] (!%p830_p4)   ;;  %v972_v9 = vld [vmem:[%s1221_s1 + $0x50] sm:$0xff] (!%p830_p4)   ;;  %v312_v30 = vlaneseq (!%p830_p4)  ;;  %vm1033_vm0 = vmmov (!%p830_p4), 0  }
   0xf   : > { %v965_v1 = vld [vmem:[%s1221_s1 + $0xc0] sm:$0xff] (!%p830_p4)   ;;  %680 = vst [vmem:[#allocation2] sm:$0x1] (!%p830_p4), %v1031_v2  ;;  %681 = vst [vmem:[#allocation3] sm:$0x1] (!%p830_p4), %v1031_v2  ;;  %876 = vmatprep.subr.bf16.mxu0 (!%p830_p4), %v964_v0  ;;  %v969_v6 = vld [vmem:[%s1221_s1 + $0xc8] sm:$0xff] (!%p830_p4)  }
  0x10   : > { %v966_v3 = vld [vmem:[%s1221_s1] sm:$0xff] (!%p830_p4)   ;;  %898 = vmatprep.subr.bf16.mxu1 (!%p830_p4), %v965_v1  ;;  %v970_v7 = vld [vmem:[%s1221_s1 + $0x8] sm:$0xff] (!%p830_p4)   ;;  %v973_v10 = vld [vmem:[%s1221_s1 + $0xd0] sm:$0xff] (!%p830_p4)   ;;  %v313_v35 = vshrl.u32 (!%p830_p4), %v312_v30, 7  ;;  %v1032_v36 = vmov (!%p830_p4), 1983009808  }
  0x11   : > { %v967_v4 = vld [vmem:[%s1221_s1 + $0x80] sm:$0xff] (!%p830_p4)   ;;  %877 = vmatpush3.bf16.msra.mxu0 (!%p830_p4), %v966_v3  ;;  %v971_v8 = vld [vmem:[%s1221_s1 + $0x88] sm:$0xff] (!%p830_p4)   ;;  %v974_v11 = vld [vmem:[%s1221_s1 + $0x10] sm:$0xff] (!%p830_p4)   ;;  %v310_v37 = vunpack.c.l.s4 (!%p830_p4), %v1032_v36  ;;  %vm552_vm1 = vcmask (!%p830_p4), 523264   ;;  %vm683_vm2 = vcmask (!%p830_p4), 1043456  }
  0x12   : > { %899 = vmatpush3.bf16.msra.mxu1 (!%p830_p4), %v967_v4  ;;  %878 = vmatprep.subr.bf16.mxu0 (!%p830_p4), %v968_v5  ;;  %v975_v12 = vld [vmem:[%s1221_s1 + $0x90] sm:$0xff] (!%p830_p4)   ;;  %v976_v13 = vld [vmem:[%s1221_s1 + $0x58] sm:$0xff] (!%p830_p4)   ;;  %v980_v17 = vld [vmem:[%s1221_s1 + $0x60] sm:$0xff] (!%p830_p4)  }
  0x13   : > { %900 = vmatprep.subr.bf16.mxu1 (!%p830_p4), %v969_v6  ;;  %v977_v14 = vld [vmem:[%s1221_s1 + $0xd8] sm:$0xff] (!%p830_p4)   ;;  %v981_v18 = vld [vmem:[%s1221_s1 + $0xe0] sm:$0xff] (!%p830_p4)   ;;  %v984_v21 = vld [vmem:[%s1221_s1 + $0x68] sm:$0xff] (!%p830_p4)   ;;  %v311_v38 = vunpack.c.0.s8 (!%p830_p4), %v310_v37 }
  0x14   : > { %v978_v15 = vld [vmem:[%s1221_s1 + $0x18] sm:$0xff] (!%p830_p4)   ;;  %v982_v19 = vld [vmem:[%s1221_s1 + $0x20] sm:$0xff] (!%p830_p4)   ;;  %v985_v22 = vld [vmem:[%s1221_s1 + $0xe8] sm:$0xff] (!%p830_p4)  }
  0x15   : > { %879 = vmatpush3.bf16.msra.mxu0 %v970_v7  ;;  %v979_v16 = vld [vmem:[%s1221_s1 + $0x98] sm:$0xff]   ;;  %v983_v20 = vld [vmem:[%s1221_s1 + $0xa0] sm:$0xff]   ;;  %v986_v23 = vld [vmem:[%s1221_s1 + $0x28] sm:$0xff]   ;;  %v314_v40 = vsub.s32 %v311_v38, %v313_v35 }
  0x16   : > { %901 = vmatpush3.bf16.msra.mxu1 %v971_v8  ;;  %880 = vmatprep.subr.bf16.mxu0 %v972_v9  ;;  %v987_v24 = vld [vmem:[%s1221_s1 + $0xa8] sm:$0xff]   ;;  %v988_v25 = vld [vmem:[%s1221_s1 + $0x70] sm:$0xff]   ;;  %v992_v29 = vld [vmem:[%s1221_s1 + $0x78] sm:$0xff]  }
  0x17   : > { %902 = vmatprep.subr.bf16.mxu1 %v973_v10  ;;  %v989_v26 = vld [vmem:[%s1221_s1 + $0xf0] sm:$0xff]   ;;  %v993_v31 = vld [vmem:[%s1221_s1 + $0xf8] sm:$0xff]   ;;  %v232_v34 = vld [vmem:[%s1220_s0] sm:$0xff] }
  0x18   : > { %v990_v27 = vld [vmem:[%s1221_s1 + $0x30] sm:$0xff]   ;;  %v994_v32 = vld [vmem:[%s1221_s1 + $0x38] sm:$0xff]   ;;  %v308_v39 = vcombine.high %v232_v34, %v232_v34  ;;  %v315_v41 = vrot.slane %v232_v34, %v314_v40  ;;  %v997_v45 = vld [vmem:[%s1221_s1 + $0x100] sm:$0xff]  }
  0x19   : > { %881 = vmatpush3.bf16.msra.mxu0 %v974_v11  ;;  %v991_v28 = vld [vmem:[%s1221_s1 + $0xb0] sm:$0xff]   ;;  %v995_v33 = vld [vmem:[%s1221_s1 + $0xb8] sm:$0xff]   ;;  %v998_v46 = vld [vmem:[%s1221_s1 + $0x108] sm:$0xff]  }
  0x1a   : > { %903 = vmatpush3.bf16.msra.mxu1 %v975_v12  ;;  %882 = vmatprep.subr.bf16.mxu0 %v976_v13  ;;  %v322_v42 = vrot.slane %v308_v39, %v314_v40  ;;  %v323_v43 = vcombine.high %v315_v41, %v315_v41  ;;  %v999_v47 = vld [vmem:[%s1221_s1 + $0x110] sm:$0xff]   ;;  %v1000_v48 = vld [vmem:[%s1221_s1 + $0x118] sm:$0xff]   ;;  %v831_v49 = vld.sshfl [vmem:[%s1220_s0 + $0x8] sm:$0x3 pattern:$0x76325410] }
  0x1b   : > { %904 = vmatprep.subr.bf16.mxu1 %v977_v14  ;;  %v682_v14 = vld [vmem:[#allocation2] sm:$0x1] }
  0x1c   : > { %v324_v44 = vcombine.high %v322_v42, %v322_v42  ;;  %588 = vmatprep.mubr.bf16.mxu0 %v323_v43 }
  0x1d   : > { %883 = vmatpush3.bf16.msra.mxu0 %v978_v15 }
  0x1e   : > { %905 = vmatpush3.bf16.msra.mxu1 %v979_v16  ;;  %884 = vmatprep.subr.bf16.mxu0 %v980_v17  ;;  %v693_v17 = vld [vmem:[#allocation3] sm:$0x1] }
  0x1f   : > { %906 = vmatprep.subr.bf16.mxu1 %v981_v18  ;;  %628 = vmatprep.mubr.bf16.mxu1 %v324_v44 }
  0x21   : > { %885 = vmatpush3.bf16.msra.mxu0 %v982_v19 }
  0x22   : > { %907 = vmatpush3.bf16.msra.mxu1 %v983_v20  ;;  %886 = vmatprep.subr.bf16.mxu0 %v984_v21 }
  0x23   : > { %908 = vmatprep.subr.bf16.mxu1 %v985_v22 }
  0x25   : > { %887 = vmatpush3.bf16.msra.mxu0 %v986_v23 }
  0x26   : > { %909 = vmatpush3.bf16.msra.mxu1 %v987_v24  ;;  %888 = vmatprep.subr.bf16.mxu0 %v988_v25 }
  0x27   : > { %910 = vmatprep.subr.bf16.mxu1 %v989_v26 }
  0x29   : > { %889 = vmatpush3.bf16.msra.mxu0 %v990_v27 }
  0x2a   : > { %911 = vmatpush3.bf16.msra.mxu1 %v991_v28  ;;  %890 = vmatprep.subr.bf16.mxu0 %v992_v29 }
  0x2b   : > { %912 = vmatprep.subr.bf16.mxu1 %v993_v31 }
  0x2d   : > { %891 = vmatpush3.bf16.msra.mxu0 %v994_v32 }
  0x2e   : > { %913 = vmatpush3.bf16.msra.mxu1 %v995_v33  ;;  %925 = vmatprep.subr.bf16.mxu0 %v1031_v2 }
  0x30   : > { %589 = vmatmul.mubr.bf16.vlgmr.msra.gmra.mrb[0].mxu0 %v315_v41 }
  0x31   : > { %629 = vmatmul.mubr.bf16.vlgmr.msra.gmra.mrb[0].mxu1 %v322_v42  ;;  %926 = vmatpush3.bf16.msra.mxu0 %v997_v45 }
  0x32   : > { %933 = vmatprep.mubr.msk.bf16.mxu0 %vm1033_vm0, %v1031_v2  ;;  %927 = vmatprep.subr.bf16.mxu0 %v1031_v2 }
  0x35   : > { %928 = vmatpush3.bf16.msra.mxu0 %v998_v46 }
  0x36   : > { %929 = vmatprep.subr.bf16.mxu0 %v1031_v2 }
  0x39   : > { %930 = vmatpush3.bf16.msra.mxu0 %v999_v47 }
  0x3a   : > { %931 = vmatprep.subr.bf16.mxu0 %v1031_v2 }
  0x3d   : > { %932 = vmatpush3.bf16.msra.mxu0 %v1000_v48 }
  0x40   : > { %934 = vmatmul.mubr.msk.bf16.vlgmr.msra.gmra.mrb[4].mxu0 %vm552_vm1, %v831_v49 }
 0x103   : > { %v892_v50 = vpop.f32.mrb[0].mxu0 }
 0x104   : > { %v914_v51 = vpop.f32.mrb[0].mxu1  ;;  %v893_v52 = vpop.f32.mrb[1].mxu0 }
 0x105   : > { %v915_v53 = vpop.f32.mrb[1].mxu1  ;;  %v894_v54 = vadd.f32 %v893_v52, %v892_v50  ;;  %v895_v56 = vpop.f32.mrb[2].mxu0 }
 0x106   : > { %v916_v55 = vadd.f32 %v915_v53, %v914_v51  ;;  %v917_v57 = vpop.f32.mrb[2].mxu1  ;;  %v896_v58 = vpop.f32.mrb[3].mxu0 }
 0x107   : > { %v918_v59 = vpop.f32.mrb[3].mxu1 }
 0x108   : > { %v631_v60 = vadd.f32 %v916_v55, %v894_v54 }
 0x113   : > { %v670_v61 = vpop.f32.mrb[4].mxu0 }
 0x114   : > { %v671_v62 = vadd.f32 %v670_v61, %v631_v60  ;;  %v935_v63 = vpop.f32.mrb[5].mxu0 }
 0x115   : > { %v673_v0 = vpop.f32.mrb[6].mxu0 }
 0x116   : > { %v684_v1 = vsel %vm683_vm2, %v671_v62, 0.0  ;;  %v694_v2 = vmul.f32 %v671_v62, %v671_v62  ;;  %706 = vst [vmem:[#allocation4] sm:$0xf] %v671_v62  ;;  %v936_v3 = vpop.f32.mrb[7].mxu0 }
 0x117   : > { %v685_v4 = vrot.slane %v684_v1, 4 }
 0x118   : > { %v695_v5 = vsel %vm683_vm2, %v694_v2, 0.0 }
 0x119   : > { %v686_v6 = vadd.f32 %v685_v4, %v684_v1  ;;  %v696_v7 = vrot.slane %v695_v5, 4 }
 0x11b   : > { %v687_v8 = vrot.slane %v686_v6, 2  ;;  %v697_v9 = vadd.f32 %v696_v7, %v695_v5 }
 0x11d   : > { %v688_v10 = vadd.f32 %v687_v8, %v686_v6  ;;  %v698_v11 = vrot.slane %v697_v9, 2 }
 0x11f   : > { %v689_v12 = vrot.slane %v688_v10, 1  ;;  %v699_v13 = vadd.f32 %v698_v11, %v697_v9 }
 0x121   : > { %v690_v15 = vadd.f32 %v689_v12, %v688_v10  ;;  %v700_v16 = vrot.slane %v699_v13, 1 }
 0x123   : > { %v691_v18 = vadd.f32 %v690_v15, %v682_v14  ;;  %v701_v19 = vadd.f32 %v700_v16, %v699_v13 }
 0x125   : > { %692 = vst [vmem:[#allocation2] sm:$0x1] %v691_v18  ;;  %v702_v20 = vadd.f32 %v701_v19, %v693_v17 }
 0x127   : > { %703 = vst [vmem:[#allocation3] sm:$0x1] %v702_v20 }
 0x128 PF: > { %p869_p5 = scmp.ne.s32.totalorder %s1021_s15, 1 }
 0x129   : > { %v726_v27 = vlaneseq (!%p869_p5)  ;;  %v713_v33 = vld [vmem:[#allocation4] sm:$0xf] (!%p869_p5)  ;;  %v721_v34 = vld [vmem:[%s1222_s2] sm:$0x1] (!%p869_p5) }
 0x12a   : > { %710 = sbr.rel (%p869_p5) target bundleno = 359 (0x167), region = 48  ;;  %v870_v39 = vld [vmem:[%s1223_s3] ss:$0 sm:$0xff] (!%p869_p5) }
 0x12b   : > { %v727_v30 = vshrl.u32 (!%p869_p5), %v726_v27, 7 }
 0x12c   : > { %v714_v21 = vld [vmem:[#allocation2] sm:$0x1] (!%p869_p5) }
 0x12d   : > { %v715_v23 = vmul.f32 (!%p869_p5), 0.25, %v714_v21  ;;  %v728_v31 = vsub.s32 (!%p869_p5), 0, %v727_v30 }
 0x12e   : > { %v716_v22 = vld [vmem:[#allocation3] sm:$0x1] (!%p869_p5) }
 0x12f   : > { %v717_v24 = vmul.f32 (!%p869_p5), 0.25, %v716_v22  ;;  %v718_v25 = vmul.f32 (!%p869_p5), %v715_v23, %v715_v23  ;;  %v729_v32 = vrot.slane (!%p869_p5), %v715_v23, %v728_v31 }
 0x131   : > { %v719_v26 = vsub.f32 %v717_v24, %v718_v25  ;;  %v731_v37 = vsub.f32 %v713_v33, %v729_v32 }
 0x133   : > { %v720_v28 = vmax.f32 %v719_v26, 0.0 }
 0x135   : > { %v722_v29 = vadd.f32 1e-05, %v720_v28 }
 0x137   : > { %1001 = vrsqrt.f32 %v722_v29 }
 0x141   : > { %v1002_v35 = vpop.eup %1001 }
 0x142   : > { %v724_v36 = vmul.f32 %v1002_v35, %v721_v34 }
 0x144   : > { %v736_v38 = vrot.slane %v724_v36, %v728_v31 }
 0x146   : > { %v738_v40 = vmul.f32 %v736_v38, %v731_v37 }
 0x148   : > { %v746_v41 = vadd.f32 %v870_v39, %v738_v40 }
 0x14a   : > { %v871_v42 = vmul.f32 -1.442695, %v746_v41 }
 0x14c   : > { %1003 = vpow2.f32 %v871_v42 }
 0x156   : > { %v1004_v43 = vpop.eup %1003 }
 0x157   : > { %v750_v44 = vadd.f32 1.0, %v1004_v43 }
 0x159   : > { %1005 = vrcp.f32 %v750_v44 }
 0x163   : > { %v1006_v45 = vpop.eup %1005 }
 0x164   : > { %v753_v46 = vpack.c.bf16 %v1006_v45, %v1006_v45 }
 0x166   : > { %754 = vst [vmem:[%s1224_s4] sm:$0x3] %v753_v46 }
 0x167 PF: > { %s14_s17 = sadd.s32 1, %s1029_s17   ;;  %s1225_s15 = smov %s1025_s16 }
 0x168   : > { %p11_p6 = scmp.ge.s32.totalorder %s14_s17, 4   ;;  %s1226_s16 = smov %s1228_s18 }
 0x16a   :  { %13 = sbr.rel (!%p11_p6) target bundleno = 2 (0x2), region = 80 }

</bundles_post_ra>
